<compile_context>
chip_gen: v7x
topology: tpu7x:2x2x1
jax: 0.10.0
libtpu: 0.0.40
codegen_flags: <defaults>
</compile_context>

<pallas_src>
import functools

import jax
import jax.numpy as jnp
from jax import lax
from jax.experimental import pallas as pl
from jax.experimental.pallas import tpu as pltpu

BN_EPS = 1e-5   # PyTorch BatchNorm1d default eps
LANE = 128


def _round_up(x, m):
    return (x + m - 1) // m * m


def _vmem():
    return pl.BlockSpec(memory_space=pltpu.MemorySpace.VMEM)


def _smem():
    return pl.BlockSpec(memory_space=pltpu.MemorySpace.SMEM)


def _bn_relu(z, gamma, beta):
    """Training-mode BatchNorm1d + ReLU, folded to one scale/shift pass over z.

    var is computed one-pass as E[z^2] - E[z]^2 and the affine is folded so the
    per-element work is a single mul+add (+max).  Zero-padded feature columns stay
    exactly zero because gamma/beta are zero-padded there (scale = shift = 0).
    """
    mu = jnp.mean(z, axis=0, keepdims=True)
    var = jnp.mean(z * z, axis=0, keepdims=True) - mu * mu
    scale = gamma * lax.rsqrt(var + BN_EPS)
    shift = beta - mu * scale
    return jnp.maximum(z * scale + shift, 0.0)


# ----------------------------------------------------------------------------
# Fused kernel: all GIN layers + BN + ReLU + global_mean_pool
# ----------------------------------------------------------------------------
def gin_fused_kernel(eps_ref,                     # SMEM [L]            (1 + eps) per layer
                     h0_ref,                      # VMEM [N, Dp]  f32   initial node embeddings
                     A_ref,                       # VMEM [N, N]   bf16  multi-edge count matrix
                     eagg_ref,                    # VMEM [N, Dp]  f32   per-node edge-emb sums
                     w1_ref, g1_ref, beta1_ref,   # [L,Dp,Hp] bf16, [L,1,Hp] f32 x2
                     w2_ref, g2_ref, beta2_ref,   # [L,Hp,Dp] bf16, [L,1,Dp] f32 x2
                     P_ref,                       # VMEM [B, N]   f32   mean-pool matrix
                     out_ref,                     # VMEM [B, Dp]  f32   pooled graph embeddings
                     h_scr):                      # VMEM scratch [N, Dp] f32
    num_layer = w1_ref.shape[0]
    h_scr[...] = h0_ref[...]

    def layer(l, carry):
        h = h_scr[...]
        # message passing (aggr='add'):  agg[i] = sum_{e: dst=i} (h[src[e]] + edge_emb[e])
        #                                       = (A @ h)[i] + e_agg[i]
        # A / e_agg are read from their refs *inside* the layer body on purpose so the
        # unrolled bodies do not keep them live in vregs across all layers.
        agg = jnp.dot(A_ref[...], h.astype(jnp.bfloat16),
                      preferred_element_type=jnp.float32) + eagg_ref[...]
        pre = eps_ref[l] * h + agg                    # eps_ref holds (1 + eps)

        # GINConv.mlp: Linear(D,2D) -> BN(2D) -> ReLU -> Linear(2D,D)
        # Linear biases are omitted: they are cancelled exactly by the mean
        # subtraction of the batch-statistics BatchNorm that immediately follows.
        z = jnp.dot(pre.astype(jnp.bfloat16), w1_ref[l],
                    preferred_element_type=jnp.float32)
        z = _bn_relu(z, g1_ref[l], beta1_ref[l])
        z = jnp.dot(z.astype(jnp.bfloat16), w2_ref[l],
                    preferred_element_type=jnp.float32)
        # outer BatchNorm1d(D) + ReLU
        h_scr[...] = _bn_relu(z, g2_ref[l], beta2_ref[l])
        return carry

    lax.fori_loop(0, num_layer, layer, 0, unroll=True)

    # global_mean_pool (P holds exact 1/|graph| weights -> kept f32; output is
    # lane-dense [B, Dp]).  The tiny graph_pred_linear head runs in the wrapper.
    out_ref[...] = jnp.dot(P_ref[...], h_scr[...], preferred_element_type=jnp.float32)


def gin_fused(one_plus_eps, h0, A, e_agg, W1, G1, Beta1, W2, G2, Beta2, P):
    N, Dp = h0.shape
    B = P.shape[0]
    L, _, Hp = W1.shape

    flops = 2 * L * (N * N * Dp + N * Dp * Hp + N * Hp * Dp) + 2 * B * N * Dp
    args = (one_plus_eps, h0, A, e_agg, W1, G1, Beta1, W2, G2, Beta2, P)
    out_bytes = B * Dp * 4
    bytes_accessed = int(sum(a.size * a.dtype.itemsize for a in args) + out_bytes)
    cost = pl.CostEstimate(flops=int(flops),
                           transcendentals=int(L * (Hp + Dp)),
                           bytes_accessed=bytes_accessed)

    # Scoped-VMEM limit sized to the real resident set + headroom (v5e default is
    # only 16 MiB scoped; cap at 64 MiB = v7x physical VMEM per TensorCore).
    scratch_bytes = N * Dp * 4
    resident = bytes_accessed + scratch_bytes
    vmem_limit = int(min(64 << 20, max(16 << 20, 2 * resident + (2 << 20))))

    in_specs = [_smem()] + [_vmem()] * (len(args) - 1)
    return pl.pallas_call(
        gin_fused_kernel,
        out_shape=jax.ShapeDtypeStruct((B, Dp), jnp.float32),
        in_specs=in_specs,
        out_specs=_vmem(),
        scratch_shapes=[pltpu.VMEM((N, Dp), jnp.float32)],
        compiler_params=pltpu.CompilerParams(vmem_limit_bytes=vmem_limit),
        cost_estimate=cost,
    )(*args)


# ----------------------------------------------------------------------------
# Parameter construction (deterministic, synthetic) — padded & stacked for TPU
# ----------------------------------------------------------------------------
def init_params(key, emb_dim, num_layer, num_task, atom_vocab, bond_vocab):
    D, H, T = emb_dim, 2 * emb_dim, num_task
    Dp, Hp = _round_up(D, LANE), _round_up(H, LANE)

    n_keys = len(atom_vocab) + len(bond_vocab) + 2 * num_layer + 2
    keys = iter(jax.random.split(key, n_keys))

    def randn(shape, scale):
        return scale * jax.random.normal(next(keys), shape, jnp.float32)

    def pad2(a, rows, cols):
        return jnp.pad(a, ((0, rows - a.shape[0]), (0, cols - a.shape[1])))

    params = {
        # AtomEncoder / BondEncoder embedding tables (one per categorical column)
        "atom_emb": [randn((v, D), 0.1) for v in atom_vocab],
        "bond_emb": [randn((v, D), 0.1) for v in bond_vocab],
    }

    w1, g1, be1, w2, g2, be2 = ([] for _ in range(6))
    for _ in range(num_layer):
        # NOTE: Linear biases are intentionally not materialised — a bias feeding
        # directly into a training-mode BatchNorm has exactly zero effect on the output.
        w1.append(pad2(randn((D, H), 0.1), Dp, Hp))
        g1.append(pad2(jnp.ones((1, H), jnp.float32), 1, Hp))
        be1.append(pad2(jnp.zeros((1, H), jnp.float32), 1, Hp))
        w2.append(pad2(randn((H, D), 0.1), Hp, Dp))
        g2.append(pad2(jnp.ones((1, D), jnp.float32), 1, Dp))
        be2.append(pad2(jnp.zeros((1, D), jnp.float32), 1, Dp))

    params.update({
        # GINConv.eps initialised to 0 in the PyTorch module -> (1 + eps) = 1
        "one_plus_eps": jnp.ones((num_layer,), jnp.float32),
        # MXU operands stored in bf16 (f32 accumulation in-kernel)
        "W1": jnp.stack(w1).astype(jnp.bfloat16),
        "G1": jnp.stack(g1), "Beta1": jnp.stack(be1),
        "W2": jnp.stack(w2).astype(jnp.bfloat16),
        "G2": jnp.stack(g2), "Beta2": jnp.stack(be2),
        # graph_pred_linear applied in the XLA wrapper (unpadded, f32, tiny)
        "Wp": randn((D, T), 0.1),
        "Bp": randn((1, T), 0.01),
    })
    return params


# ----------------------------------------------------------------------------
# Full forward: embedding lookups + O(E) graph-structure scatters as plain-JAX glue,
# all dense per-layer math inside the fused Pallas kernel, tiny head in the wrapper.
# ----------------------------------------------------------------------------
def gin_forward(params, x, edge_index, edge_attr, batch, num_graphs):
    N = x.shape[0]
    E = edge_attr.shape[0]
    D = params["atom_emb"][0].shape[1]
    Dp = params["W1"].shape[1]

    # AtomEncoder: sum of per-column embedding lookups
    h = jnp.zeros((N, D), jnp.float32)
    for c, table in enumerate(params["atom_emb"]):
        h = h + jnp.take(table, x[:, c], axis=0)
    # BondEncoder
    e = jnp.zeros((E, D), jnp.float32)
    for c, table in enumerate(params["bond_emb"]):
        e = e + jnp.take(table, edge_attr[:, c], axis=0)

    src, dst = edge_index[0], edge_index[1]
    # Graph-structure precompute (constant across all layers):
    #   A[i, j]  = #edges j -> i   (scattered directly in bf16: exact for <256 parallel
    #                               edges per pair, no dense f32 intermediate + cast)
    #   e_agg[i] = sum_{e: dst[e] = i} edge_emb[e]
    # TODO(synk): A is constant per batch — cache/reuse it across forward calls, and at
    #             large N switch to edge-index scalar prefetch instead of dense A.
    A = jnp.zeros((N, N), jnp.bfloat16).at[dst, src].add(jnp.bfloat16(1.0))
    e_agg = jnp.zeros((N, D), jnp.float32).at[dst].add(e)

    # global_mean_pool matrix: P[b, i] = 1/|graph b| if node i in graph b else 0
    onehot_b = jax.nn.one_hot(batch, num_graphs, dtype=jnp.float32)   # [N, B]
    counts = jnp.maximum(jnp.sum(onehot_b, axis=0), 1.0)              # [B]
    P = jnp.transpose(onehot_b) / counts[:, None]                     # [B, N]

    # lane-pad the feature dim (zero columns stay exactly zero through all layers)
    h0 = jnp.pad(h, ((0, 0), (0, Dp - D)))
    e_agg = jnp.pad(e_agg, ((0, 0), (0, Dp - D)))

    hg = gin_fused(params["one_plus_eps"], h0, A, e_agg,
                   params["W1"], params["G1"], params["Beta1"],
                   params["W2"], params["G2"], params["Beta2"], P)

    # graph_pred_linear: tiny [B, D] x [D, num_task] head kept in the XLA wrapper
    return jnp.dot(hg[:, :D], params["Wp"]) + params["Bp"]


if __name__ == "__main__":
    # Small synthetic graph batch
    NUM_LAYER = 5
    EMB_DIM = 64
    NUM_TASK = 2
    N_NODES = 32
    N_EDGES = 64
    N_GRAPHS = 4
    ATOM_VOCAB = [16] * 9   # 9 categorical atom-feature columns
    BOND_VOCAB = [8] * 3    # 3 categorical bond-feature columns

    key = jax.random.PRNGKey(0)
    k_param, k_x, k_e, k_src, k_dst = jax.random.split(key, 5)

    params = init_params(k_param, EMB_DIM, NUM_LAYER, NUM_TASK, ATOM_VOCAB, BOND_VOCAB)

    x = jax.random.randint(k_x, (N_NODES, len(ATOM_VOCAB)), 0, ATOM_VOCAB[0], dtype=jnp.int32)
    edge_attr = jax.random.randint(k_e, (N_EDGES, len(BOND_VOCAB)), 0, BOND_VOCAB[0], dtype=jnp.int32)
    src = jax.random.randint(k_src, (N_EDGES,), 0, N_NODES, dtype=jnp.int32)
    dst = jax.random.randint(k_dst, (N_EDGES,), 0, N_NODES, dtype=jnp.int32)
    edge_index = jnp.stack([src, dst], axis=0)                              # [2, E]
    batch = jnp.arange(N_NODES, dtype=jnp.int32) // (N_NODES // N_GRAPHS)   # [N]

    fwd = jax.jit(functools.partial(gin_forward, num_graphs=N_GRAPHS))
    out = fwd(params, x, edge_index, edge_attr, batch)
    out = jax.block_until_ready(out)
    assert out.shape == (N_GRAPHS, NUM_TASK) and out.dtype == jnp.float32
    print("KERNEL_OK")
</pallas_src>

<mosaic_0001>
module attributes {stable_mosaic.version = 11 : i64} {
  func.func @gin_fused_kernel(%arg0: memref<5xf32, #tpu.memory_space<smem>>, %arg1: memref<32x128xf32, #tpu.memory_space<vmem>>, %arg2: memref<32x32xbf16, #tpu.memory_space<vmem>>, %arg3: memref<32x128xf32, #tpu.memory_space<vmem>>, %arg4: memref<5x128x128xbf16, #tpu.memory_space<vmem>>, %arg5: memref<5x1x128xf32, #tpu.memory_space<vmem>>, %arg6: memref<5x1x128xf32, #tpu.memory_space<vmem>>, %arg7: memref<5x128x128xbf16, #tpu.memory_space<vmem>>, %arg8: memref<5x1x128xf32, #tpu.memory_space<vmem>>, %arg9: memref<5x1x128xf32, #tpu.memory_space<vmem>>, %arg10: memref<4x32xf32, #tpu.memory_space<vmem>>, %arg11: memref<4x128xf32, #tpu.memory_space<vmem>>, %arg12: memref<32x128xf32, #tpu.memory_space<vmem>>) attributes {dimension_semantics = [], scalar_prefetch = 0 : i64, scratch_operands = 1 : i64, tpu.core_type = #tpu.core_type<tc>} {
    %c0 = arith.constant 0 : index
    %c0_0 = arith.constant 0 : index
    %0 = vector.load %arg1[%c0, %c0_0] : memref<32x128xf32, #tpu.memory_space<vmem>>, vector<32x128xf32>
    %c0_1 = arith.constant 0 : index
    %c0_2 = arith.constant 0 : index
    %1 = vector.load %arg12[%c0_1, %c0_2] : memref<32x128xf32, #tpu.memory_space<vmem>>, vector<32x128xf32>
    tpu.vector_store %arg12[%c0_1, %c0_2], %0 {strides = array<i32>} : memref<32x128xf32, #tpu.memory_space<vmem>>, vector<32x128xf32>,
    %c0_i32 = arith.constant 0 : i32
    %c0_3 = arith.constant 0 : index
    %c0_4 = arith.constant 0 : index
    %2 = vector.load %arg12[%c0_3, %c0_4] : memref<32x128xf32, #tpu.memory_space<vmem>>, vector<32x128xf32>
    %c0_5 = arith.constant 0 : index
    %c0_6 = arith.constant 0 : index
    %3 = vector.load %arg2[%c0_5, %c0_6] : memref<32x32xbf16, #tpu.memory_space<vmem>>, vector<32x32xbf16>
    %4 = arith.truncf %2 : vector<32x128xf32> to vector<32x128xbf16>
    %cst = arith.constant dense<0.000000e+00> : vector<32x128xf32>
    %5 = tpu.matmul %3, %4, %cst {dimension_numbers = #tpu.dot_dimension_numbers<[1], [0], [0], [1], [0, 0, 1, 1], [], []>} : vector<32x32xbf16>, vector<32x128xbf16>, vector<32x128xf32> -> vector<32x128xf32>
    %c0_7 = arith.constant 0 : index
    %c0_8 = arith.constant 0 : index
    %6 = vector.load %arg3[%c0_7, %c0_8] : memref<32x128xf32, #tpu.memory_space<vmem>>, vector<32x128xf32>
    %7 = arith.addf %5, %6 : vector<32x128xf32>
    %8 = arith.index_cast %c0_i32 : i32 to index
    %9 = memref.load %arg0[%8] : memref<5xf32, #tpu.memory_space<smem>>
    %10 = vector.broadcast %9 : f32 to vector<32x128xf32>
    %11 = arith.mulf %10, %2 : vector<32x128xf32>
    %12 = arith.addf %11, %7 : vector<32x128xf32>
    %13 = arith.truncf %12 : vector<32x128xf32> to vector<32x128xbf16>
    %14 = arith.index_cast %c0_i32 : i32 to index
    %c0_9 = arith.constant 0 : index
    %c0_10 = arith.constant 0 : index
    %15 = vector.load %arg4[%14, %c0_9, %c0_10] : memref<5x128x128xbf16, #tpu.memory_space<vmem>>, vector<1x128x128xbf16>
    %16 = vector.shape_cast %15 : vector<1x128x128xbf16> to vector<128x128xbf16>
    %cst_11 = arith.constant dense<0.000000e+00> : vector<32x128xf32>
    %17 = tpu.matmul %13, %16, %cst_11 {dimension_numbers = #tpu.dot_dimension_numbers<[1], [0], [0], [1], [0, 0, 1, 1], [], []>} : vector<32x128xbf16>, vector<128x128xbf16>, vector<32x128xf32> -> vector<32x128xf32>
    %18 = arith.index_cast %c0_i32 : i32 to index
    %c0_12 = arith.constant 0 : index
    %c0_13 = arith.constant 0 : index
    %19 = vector.load %arg5[%18, %c0_12, %c0_13] : memref<5x1x128xf32, #tpu.memory_space<vmem>>, vector<1x1x128xf32>
    %20 = vector.shape_cast %19 : vector<1x1x128xf32> to vector<1x128xf32>
    %21 = arith.index_cast %c0_i32 : i32 to index
    %c0_14 = arith.constant 0 : index
    %c0_15 = arith.constant 0 : index
    %22 = vector.load %arg6[%21, %c0_14, %c0_15] : memref<5x1x128xf32, #tpu.memory_space<vmem>>, vector<1x1x128xf32>
    %23 = vector.shape_cast %22 : vector<1x1x128xf32> to vector<1x128xf32>
    %cst_16 = arith.constant dense<0.000000e+00> : vector<128xf32>
    %24 = vector.multi_reduction <add>, %17, %cst_16 [0] : vector<32x128xf32> to vector<128xf32>
    %25 = vector.shape_cast %24 : vector<128xf32> to vector<1x128xf32>
    %cst_17 = arith.constant 3.200000e+01 : f32
    %26 = vector.broadcast %cst_17 : f32 to vector<1x128xf32>
    %27 = arith.divf %25, %26 : vector<1x128xf32>
    %28 = arith.mulf %17, %17 : vector<32x128xf32>
    %cst_18 = arith.constant dense<0.000000e+00> : vector<128xf32>
    %29 = vector.multi_reduction <add>, %28, %cst_18 [0] : vector<32x128xf32> to vector<128xf32>
    %30 = vector.shape_cast %29 : vector<128xf32> to vector<1x128xf32>
    %cst_19 = arith.constant 3.200000e+01 : f32
    %31 = vector.broadcast %cst_19 : f32 to vector<1x128xf32>
    %32 = arith.divf %30, %31 : vector<1x128xf32>
    %33 = arith.mulf %27, %27 : vector<1x128xf32>
    %34 = arith.subf %32, %33 : vector<1x128xf32>
    %cst_20 = arith.constant 9.99999974E-6 : f32
    %35 = vector.broadcast %cst_20 : f32 to vector<1x128xf32>
    %36 = arith.addf %34, %35 : vector<1x128xf32>
    %37 = math.rsqrt %36 : vector<1x128xf32>
    %38 = arith.mulf %20, %37 : vector<1x128xf32>
    %39 = arith.mulf %27, %38 : vector<1x128xf32>
    %40 = arith.subf %23, %39 : vector<1x128xf32>
    %41 = vector.broadcast %38 : vector<1x128xf32> to vector<32x128xf32>
    %42 = arith.mulf %17, %41 : vector<32x128xf32>
    %43 = vector.broadcast %40 : vector<1x128xf32> to vector<32x128xf32>
    %44 = arith.addf %42, %43 : vector<32x128xf32>
    %cst_21 = arith.constant 0.000000e+00 : f32
    %45 = vector.broadcast %cst_21 : f32 to vector<32x128xf32>
    %46 = arith.maximumf %44, %45 : vector<32x128xf32>
    %47 = arith.truncf %46 : vector<32x128xf32> to vector<32x128xbf16>
    %48 = arith.index_cast %c0_i32 : i32 to index
    %c0_22 = arith.constant 0 : index
    %c0_23 = arith.constant 0 : index
    %49 = vector.load %arg7[%48, %c0_22, %c0_23] : memref<5x128x128xbf16, #tpu.memory_space<vmem>>, vector<1x128x128xbf16>
    %50 = vector.shape_cast %49 : vector<1x128x128xbf16> to vector<128x128xbf16>
    %cst_24 = arith.constant dense<0.000000e+00> : vector<32x128xf32>
    %51 = tpu.matmul %47, %50, %cst_24 {dimension_numbers = #tpu.dot_dimension_numbers<[1], [0], [0], [1], [0, 0, 1, 1], [], []>} : vector<32x128xbf16>, vector<128x128xbf16>, vector<32x128xf32> -> vector<32x128xf32>
    %52 = arith.index_cast %c0_i32 : i32 to index
    %c0_25 = arith.constant 0 : index
    %c0_26 = arith.constant 0 : index
    %53 = vector.load %arg8[%52, %c0_25, %c0_26] : memref<5x1x128xf32, #tpu.memory_space<vmem>>, vector<1x1x128xf32>
    %54 = vector.shape_cast %53 : vector<1x1x128xf32> to vector<1x128xf32>
    %55 = arith.index_cast %c0_i32 : i32 to index
    %c0_27 = arith.constant 0 : index
    %c0_28 = arith.constant 0 : index
    %56 = vector.load %arg9[%55, %c0_27, %c0_28] : memref<5x1x128xf32, #tpu.memory_space<vmem>>, vector<1x1x128xf32>
    %57 = vector.shape_cast %56 : vector<1x1x128xf32> to vector<1x128xf32>
    %cst_29 = arith.constant dense<0.000000e+00> : vector<128xf32>
    %58 = vector.multi_reduction <add>, %51, %cst_29 [0] : vector<32x128xf32> to vector<128xf32>
    %59 = vector.shape_cast %58 : vector<128xf32> to vector<1x128xf32>
    %cst_30 = arith.constant 3.200000e+01 : f32
    %60 = vector.broadcast %cst_30 : f32 to vector<1x128xf32>
    %61 = arith.divf %59, %60 : vector<1x128xf32>
    %62 = arith.mulf %51, %51 : vector<32x128xf32>
    %cst_31 = arith.constant dense<0.000000e+00> : vector<128xf32>
    %63 = vector.multi_reduction <add>, %62, %cst_31 [0] : vector<32x128xf32> to vector<128xf32>
    %64 = vector.shape_cast %63 : vector<128xf32> to vector<1x128xf32>
    %cst_32 = arith.constant 3.200000e+01 : f32
    %65 = vector.broadcast %cst_32 : f32 to vector<1x128xf32>
    %66 = arith.divf %64, %65 : vector<1x128xf32>
    %67 = arith.mulf %61, %61 : vector<1x128xf32>
    %68 = arith.subf %66, %67 : vector<1x128xf32>
    %cst_33 = arith.constant 9.99999974E-6 : f32
    %69 = vector.broadcast %cst_33 : f32 to vector<1x128xf32>
    %70 = arith.addf %68, %69 : vector<1x128xf32>
    %71 = math.rsqrt %70 : vector<1x128xf32>
    %72 = arith.mulf %54, %71 : vector<1x128xf32>
    %73 = arith.mulf %61, %72 : vector<1x128xf32>
    %74 = arith.subf %57, %73 : vector<1x128xf32>
    %75 = vector.broadcast %72 : vector<1x128xf32> to vector<32x128xf32>
    %76 = arith.mulf %51, %75 : vector<32x128xf32>
    %77 = vector.broadcast %74 : vector<1x128xf32> to vector<32x128xf32>
    %78 = arith.addf %76, %77 : vector<32x128xf32>
    %cst_34 = arith.constant 0.000000e+00 : f32
    %79 = vector.broadcast %cst_34 : f32 to vector<32x128xf32>
    %80 = arith.maximumf %78, %79 : vector<32x128xf32>
    %c0_35 = arith.constant 0 : index
    %c0_36 = arith.constant 0 : index
    %81 = vector.load %arg12[%c0_35, %c0_36] : memref<32x128xf32, #tpu.memory_space<vmem>>, vector<32x128xf32>
    tpu.vector_store %arg12[%c0_35, %c0_36], %80 {strides = array<i32>} : memref<32x128xf32, #tpu.memory_space<vmem>>, vector<32x128xf32>,
    %c1_i32 = arith.constant 1 : i32
    %c0_37 = arith.constant 0 : index
    %c0_38 = arith.constant 0 : index
    %82 = vector.load %arg12[%c0_37, %c0_38] : memref<32x128xf32, #tpu.memory_space<vmem>>, vector<32x128xf32>
    %c0_39 = arith.constant 0 : index
    %c0_40 = arith.constant 0 : index
    %83 = vector.load %arg2[%c0_39, %c0_40] : memref<32x32xbf16, #tpu.memory_space<vmem>>, vector<32x32xbf16>
    %84 = arith.truncf %82 : vector<32x128xf32> to vector<32x128xbf16>
    %cst_41 = arith.constant dense<0.000000e+00> : vector<32x128xf32>
    %85 = tpu.matmul %83, %84, %cst_41 {dimension_numbers = #tpu.dot_dimension_numbers<[1], [0], [0], [1], [0, 0, 1, 1], [], []>} : vector<32x32xbf16>, vector<32x128xbf16>, vector<32x128xf32> -> vector<32x128xf32>
    %c0_42 = arith.constant 0 : index
    %c0_43 = arith.constant 0 : index
    %86 = vector.load %arg3[%c0_42, %c0_43] : memref<32x128xf32, #tpu.memory_space<vmem>>, vector<32x128xf32>
    %87 = arith.addf %85, %86 : vector<32x128xf32>
    %88 = arith.index_cast %c1_i32 : i32 to index
    %89 = memref.load %arg0[%88] : memref<5xf32, #tpu.memory_space<smem>>
    %90 = vector.broadcast %89 : f32 to vector<32x128xf32>
    %91 = arith.mulf %90, %82 : vector<32x128xf32>
    %92 = arith.addf %91, %87 : vector<32x128xf32>
    %93 = arith.truncf %92 : vector<32x128xf32> to vector<32x128xbf16>
    %94 = arith.index_cast %c1_i32 : i32 to index
    %c0_44 = arith.constant 0 : index
    %c0_45 = arith.constant 0 : index
    %95 = vector.load %arg4[%94, %c0_44, %c0_45] : memref<5x128x128xbf16, #tpu.memory_space<vmem>>, vector<1x128x128xbf16>
    %96 = vector.shape_cast %95 : vector<1x128x128xbf16> to vector<128x128xbf16>
    %cst_46 = arith.constant dense<0.000000e+00> : vector<32x128xf32>
    %97 = tpu.matmul %93, %96, %cst_46 {dimension_numbers = #tpu.dot_dimension_numbers<[1], [0], [0], [1], [0, 0, 1, 1], [], []>} : vector<32x128xbf16>, vector<128x128xbf16>, vector<32x128xf32> -> vector<32x128xf32>
    %98 = arith.index_cast %c1_i32 : i32 to index
    %c0_47 = arith.constant 0 : index
    %c0_48 = arith.constant 0 : index
    %99 = vector.load %arg5[%98, %c0_47, %c0_48] : memref<5x1x128xf32, #tpu.memory_space<vmem>>, vector<1x1x128xf32>
    %100 = vector.shape_cast %99 : vector<1x1x128xf32> to vector<1x128xf32>
    %101 = arith.index_cast %c1_i32 : i32 to index
    %c0_49 = arith.constant 0 : index
    %c0_50 = arith.constant 0 : index
    %102 = vector.load %arg6[%101, %c0_49, %c0_50] : memref<5x1x128xf32, #tpu.memory_space<vmem>>, vector<1x1x128xf32>
    %103 = vector.shape_cast %102 : vector<1x1x128xf32> to vector<1x128xf32>
    %cst_51 = arith.constant dense<0.000000e+00> : vector<128xf32>
    %104 = vector.multi_reduction <add>, %97, %cst_51 [0] : vector<32x128xf32> to vector<128xf32>
    %105 = vector.shape_cast %104 : vector<128xf32> to vector<1x128xf32>
    %cst_52 = arith.constant 3.200000e+01 : f32
    %106 = vector.broadcast %cst_52 : f32 to vector<1x128xf32>
    %107 = arith.divf %105, %106 : vector<1x128xf32>
    %108 = arith.mulf %97, %97 : vector<32x128xf32>
    %cst_53 = arith.constant dense<0.000000e+00> : vector<128xf32>
    %109 = vector.multi_reduction <add>, %108, %cst_53 [0] : vector<32x128xf32> to vector<128xf32>
    %110 = vector.shape_cast %109 : vector<128xf32> to vector<1x128xf32>
    %cst_54 = arith.constant 3.200000e+01 : f32
    %111 = vector.broadcast %cst_54 : f32 to vector<1x128xf32>
    %112 = arith.divf %110, %111 : vector<1x128xf32>
    %113 = arith.mulf %107, %107 : vector<1x128xf32>
    %114 = arith.subf %112, %113 : vector<1x128xf32>
    %cst_55 = arith.constant 9.99999974E-6 : f32
    %115 = vector.broadcast %cst_55 : f32 to vector<1x128xf32>
    %116 = arith.addf %114, %115 : vector<1x128xf32>
    %117 = math.rsqrt %116 : vector<1x128xf32>
    %118 = arith.mulf %100, %117 : vector<1x128xf32>
    %119 = arith.mulf %107, %118 : vector<1x128xf32>
    %120 = arith.subf %103, %119 : vector<1x128xf32>
    %121 = vector.broadcast %118 : vector<1x128xf32> to vector<32x128xf32>
    %122 = arith.mulf %97, %121 : vector<32x128xf32>
    %123 = vector.broadcast %120 : vector<1x128xf32> to vector<32x128xf32>
    %124 = arith.addf %122, %123 : vector<32x128xf32>
    %cst_56 = arith.constant 0.000000e+00 : f32
    %125 = vector.broadcast %cst_56 : f32 to vector<32x128xf32>
    %126 = arith.maximumf %124, %125 : vector<32x128xf32>
    %127 = arith.truncf %126 : vector<32x128xf32> to vector<32x128xbf16>
    %128 = arith.index_cast %c1_i32 : i32 to index
    %c0_57 = arith.constant 0 : index
    %c0_58 = arith.constant 0 : index
    %129 = vector.load %arg7[%128, %c0_57, %c0_58] : memref<5x128x128xbf16, #tpu.memory_space<vmem>>, vector<1x128x128xbf16>
    %130 = vector.shape_cast %129 : vector<1x128x128xbf16> to vector<128x128xbf16>
    %cst_59 = arith.constant dense<0.000000e+00> : vector<32x128xf32>
    %131 = tpu.matmul %127, %130, %cst_59 {dimension_numbers = #tpu.dot_dimension_numbers<[1], [0], [0], [1], [0, 0, 1, 1], [], []>} : vector<32x128xbf16>, vector<128x128xbf16>, vector<32x128xf32> -> vector<32x128xf32>
    %132 = arith.index_cast %c1_i32 : i32 to index
    %c0_60 = arith.constant 0 : index
    %c0_61 = arith.constant 0 : index
    %133 = vector.load %arg8[%132, %c0_60, %c0_61] : memref<5x1x128xf32, #tpu.memory_space<vmem>>, vector<1x1x128xf32>
    %134 = vector.shape_cast %133 : vector<1x1x128xf32> to vector<1x128xf32>
    %135 = arith.index_cast %c1_i32 : i32 to index
    %c0_62 = arith.constant 0 : index
    %c0_63 = arith.constant 0 : index
    %136 = vector.load %arg9[%135, %c0_62, %c0_63] : memref<5x1x128xf32, #tpu.memory_space<vmem>>, vector<1x1x128xf32>
    %137 = vector.shape_cast %136 : vector<1x1x128xf32> to vector<1x128xf32>
    %cst_64 = arith.constant dense<0.000000e+00> : vector<128xf32>
    %138 = vector.multi_reduction <add>, %131, %cst_64 [0] : vector<32x128xf32> to vector<128xf32>
    %139 = vector.shape_cast %138 : vector<128xf32> to vector<1x128xf32>
    %cst_65 = arith.constant 3.200000e+01 : f32
    %140 = vector.broadcast %cst_65 : f32 to vector<1x128xf32>
    %141 = arith.divf %139, %140 : vector<1x128xf32>
    %142 = arith.mulf %131, %131 : vector<32x128xf32>
    %cst_66 = arith.constant dense<0.000000e+00> : vector<128xf32>
    %143 = vector.multi_reduction <add>, %142, %cst_66 [0] : vector<32x128xf32> to vector<128xf32>
    %144 = vector.shape_cast %143 : vector<128xf32> to vector<1x128xf32>
    %cst_67 = arith.constant 3.200000e+01 : f32
    %145 = vector.broadcast %cst_67 : f32 to vector<1x128xf32>
    %146 = arith.divf %144, %145 : vector<1x128xf32>
    %147 = arith.mulf %141, %141 : vector<1x128xf32>
    %148 = arith.subf %146, %147 : vector<1x128xf32>
    %cst_68 = arith.constant 9.99999974E-6 : f32
    %149 = vector.broadcast %cst_68 : f32 to vector<1x128xf32>
    %150 = arith.addf %148, %149 : vector<1x128xf32>
    %151 = math.rsqrt %150 : vector<1x128xf32>
    %152 = arith.mulf %134, %151 : vector<1x128xf32>
    %153 = arith.mulf %141, %152 : vector<1x128xf32>
    %154 = arith.subf %137, %153 : vector<1x128xf32>
    %155 = vector.broadcast %152 : vector<1x128xf32> to vector<32x128xf32>
    %156 = arith.mulf %131, %155 : vector<32x128xf32>
    %157 = vector.broadcast %154 : vector<1x128xf32> to vector<32x128xf32>
    %158 = arith.addf %156, %157 : vector<32x128xf32>
    %cst_69 = arith.constant 0.000000e+00 : f32
    %159 = vector.broadcast %cst_69 : f32 to vector<32x128xf32>
    %160 = arith.maximumf %158, %159 : vector<32x128xf32>
    %c0_70 = arith.constant 0 : index
    %c0_71 = arith.constant 0 : index
    %161 = vector.load %arg12[%c0_70, %c0_71] : memref<32x128xf32, #tpu.memory_space<vmem>>, vector<32x128xf32>
    tpu.vector_store %arg12[%c0_70, %c0_71], %160 {strides = array<i32>} : memref<32x128xf32, #tpu.memory_space<vmem>>, vector<32x128xf32>,
    %c2_i32 = arith.constant 2 : i32
    %c0_72 = arith.constant 0 : index
    %c0_73 = arith.constant 0 : index
    %162 = vector.load %arg12[%c0_72, %c0_73] : memref<32x128xf32, #tpu.memory_space<vmem>>, vector<32x128xf32>
    %c0_74 = arith.constant 0 : index
    %c0_75 = arith.constant 0 : index
    %163 = vector.load %arg2[%c0_74, %c0_75] : memref<32x32xbf16, #tpu.memory_space<vmem>>, vector<32x32xbf16>
    %164 = arith.truncf %162 : vector<32x128xf32> to vector<32x128xbf16>
    %cst_76 = arith.constant dense<0.000000e+00> : vector<32x128xf32>
    %165 = tpu.matmul %163, %164, %cst_76 {dimension_numbers = #tpu.dot_dimension_numbers<[1], [0], [0], [1], [0, 0, 1, 1], [], []>} : vector<32x32xbf16>, vector<32x128xbf16>, vector<32x128xf32> -> vector<32x128xf32>
    %c0_77 = arith.constant 0 : index
    %c0_78 = arith.constant 0 : index
    %166 = vector.load %arg3[%c0_77, %c0_78] : memref<32x128xf32, #tpu.memory_space<vmem>>, vector<32x128xf32>
    %167 = arith.addf %165, %166 : vector<32x128xf32>
    %168 = arith.index_cast %c2_i32 : i32 to index
    %169 = memref.load %arg0[%168] : memref<5xf32, #tpu.memory_space<smem>>
    %170 = vector.broadcast %169 : f32 to vector<32x128xf32>
    %171 = arith.mulf %170, %162 : vector<32x128xf32>
    %172 = arith.addf %171, %167 : vector<32x128xf32>
    %173 = arith.truncf %172 : vector<32x128xf32> to vector<32x128xbf16>
    %174 = arith.index_cast %c2_i32 : i32 to index
    %c0_79 = arith.constant 0 : index
    %c0_80 = arith.constant 0 : index
    %175 = vector.load %arg4[%174, %c0_79, %c0_80] : memref<5x128x128xbf16, #tpu.memory_space<vmem>>, vector<1x128x128xbf16>
    %176 = vector.shape_cast %175 : vector<1x128x128xbf16> to vector<128x128xbf16>
    %cst_81 = arith.constant dense<0.000000e+00> : vector<32x128xf32>
    %177 = tpu.matmul %173, %176, %cst_81 {dimension_numbers = #tpu.dot_dimension_numbers<[1], [0], [0], [1], [0, 0, 1, 1], [], []>} : vector<32x128xbf16>, vector<128x128xbf16>, vector<32x128xf32> -> vector<32x128xf32>
    %178 = arith.index_cast %c2_i32 : i32 to index
    %c0_82 = arith.constant 0 : index
    %c0_83 = arith.constant 0 : index
    %179 = vector.load %arg5[%178, %c0_82, %c0_83] : memref<5x1x128xf32, #tpu.memory_space<vmem>>, vector<1x1x128xf32>
    %180 = vector.shape_cast %179 : vector<1x1x128xf32> to vector<1x128xf32>
    %181 = arith.index_cast %c2_i32 : i32 to index
    %c0_84 = arith.constant 0 : index
    %c0_85 = arith.constant 0 : index
    %182 = vector.load %arg6[%181, %c0_84, %c0_85] : memref<5x1x128xf32, #tpu.memory_space<vmem>>, vector<1x1x128xf32>
    %183 = vector.shape_cast %182 : vector<1x1x128xf32> to vector<1x128xf32>
    %cst_86 = arith.constant dense<0.000000e+00> : vector<128xf32>
    %184 = vector.multi_reduction <add>, %177, %cst_86 [0] : vector<32x128xf32> to vector<128xf32>
    %185 = vector.shape_cast %184 : vector<128xf32> to vector<1x128xf32>
    %cst_87 = arith.constant 3.200000e+01 : f32
    %186 = vector.broadcast %cst_87 : f32 to vector<1x128xf32>
    %187 = arith.divf %185, %186 : vector<1x128xf32>
    %188 = arith.mulf %177, %177 : vector<32x128xf32>
    %cst_88 = arith.constant dense<0.000000e+00> : vector<128xf32>
    %189 = vector.multi_reduction <add>, %188, %cst_88 [0] : vector<32x128xf32> to vector<128xf32>
    %190 = vector.shape_cast %189 : vector<128xf32> to vector<1x128xf32>
    %cst_89 = arith.constant 3.200000e+01 : f32
    %191 = vector.broadcast %cst_89 : f32 to vector<1x128xf32>
    %192 = arith.divf %190, %191 : vector<1x128xf32>
    %193 = arith.mulf %187, %187 : vector<1x128xf32>
    %194 = arith.subf %192, %193 : vector<1x128xf32>
    %cst_90 = arith.constant 9.99999974E-6 : f32
    %195 = vector.broadcast %cst_90 : f32 to vector<1x128xf32>
    %196 = arith.addf %194, %195 : vector<1x128xf32>
    %197 = math.rsqrt %196 : vector<1x128xf32>
    %198 = arith.mulf %180, %197 : vector<1x128xf32>
    %199 = arith.mulf %187, %198 : vector<1x128xf32>
    %200 = arith.subf %183, %199 : vector<1x128xf32>
    %201 = vector.broadcast %198 : vector<1x128xf32> to vector<32x128xf32>
    %202 = arith.mulf %177, %201 : vector<32x128xf32>
    %203 = vector.broadcast %200 : vector<1x128xf32> to vector<32x128xf32>
    %204 = arith.addf %202, %203 : vector<32x128xf32>
    %cst_91 = arith.constant 0.000000e+00 : f32
    %205 = vector.broadcast %cst_91 : f32 to vector<32x128xf32>
    %206 = arith.maximumf %204, %205 : vector<32x128xf32>
    %207 = arith.truncf %206 : vector<32x128xf32> to vector<32x128xbf16>
    %208 = arith.index_cast %c2_i32 : i32 to index
    %c0_92 = arith.constant 0 : index
    %c0_93 = arith.constant 0 : index
    %209 = vector.load %arg7[%208, %c0_92, %c0_93] : memref<5x128x128xbf16, #tpu.memory_space<vmem>>, vector<1x128x128xbf16>
    %210 = vector.shape_cast %209 : vector<1x128x128xbf16> to vector<128x128xbf16>
    %cst_94 = arith.constant dense<0.000000e+00> : vector<32x128xf32>
    %211 = tpu.matmul %207, %210, %cst_94 {dimension_numbers = #tpu.dot_dimension_numbers<[1], [0], [0], [1], [0, 0, 1, 1], [], []>} : vector<32x128xbf16>, vector<128x128xbf16>, vector<32x128xf32> -> vector<32x128xf32>
    %212 = arith.index_cast %c2_i32 : i32 to index
    %c0_95 = arith.constant 0 : index
    %c0_96 = arith.constant 0 : index
    %213 = vector.load %arg8[%212, %c0_95, %c0_96] : memref<5x1x128xf32, #tpu.memory_space<vmem>>, vector<1x1x128xf32>
    %214 = vector.shape_cast %213 : vector<1x1x128xf32> to vector<1x128xf32>
    %215 = arith.index_cast %c2_i32 : i32 to index
    %c0_97 = arith.constant 0 : index
    %c0_98 = arith.constant 0 : index
    %216 = vector.load %arg9[%215, %c0_97, %c0_98] : memref<5x1x128xf32, #tpu.memory_space<vmem>>, vector<1x1x128xf32>
    %217 = vector.shape_cast %216 : vector<1x1x128xf32> to vector<1x128xf32>
    %cst_99 = arith.constant dense<0.000000e+00> : vector<128xf32>
    %218 = vector.multi_reduction <add>, %211, %cst_99 [0] : vector<32x128xf32> to vector<128xf32>
    %219 = vector.shape_cast %218 : vector<128xf32> to vector<1x128xf32>
    %cst_100 = arith.constant 3.200000e+01 : f32
    %220 = vector.broadcast %cst_100 : f32 to vector<1x128xf32>
    %221 = arith.divf %219, %220 : vector<1x128xf32>
    %222 = arith.mulf %211, %211 : vector<32x128xf32>
    %cst_101 = arith.constant dense<0.000000e+00> : vector<128xf32>
    %223 = vector.multi_reduction <add>, %222, %cst_101 [0] : vector<32x128xf32> to vector<128xf32>
    %224 = vector.shape_cast %223 : vector<128xf32> to vector<1x128xf32>
    %cst_102 = arith.constant 3.200000e+01 : f32
    %225 = vector.broadcast %cst_102 : f32 to vector<1x128xf32>
    %226 = arith.divf %224, %225 : vector<1x128xf32>
    %227 = arith.mulf %221, %221 : vector<1x128xf32>
    %228 = arith.subf %226, %227 : vector<1x128xf32>
    %cst_103 = arith.constant 9.99999974E-6 : f32
    %229 = vector.broadcast %cst_103 : f32 to vector<1x128xf32>
    %230 = arith.addf %228, %229 : vector<1x128xf32>
    %231 = math.rsqrt %230 : vector<1x128xf32>
    %232 = arith.mulf %214, %231 : vector<1x128xf32>
    %233 = arith.mulf %221, %232 : vector<1x128xf32>
    %234 = arith.subf %217, %233 : vector<1x128xf32>
    %235 = vector.broadcast %232 : vector<1x128xf32> to vector<32x128xf32>
    %236 = arith.mulf %211, %235 : vector<32x128xf32>
    %237 = vector.broadcast %234 : vector<1x128xf32> to vector<32x128xf32>
    %238 = arith.addf %236, %237 : vector<32x128xf32>
    %cst_104 = arith.constant 0.000000e+00 : f32
    %239 = vector.broadcast %cst_104 : f32 to vector<32x128xf32>
    %240 = arith.maximumf %238, %239 : vector<32x128xf32>
    %c0_105 = arith.constant 0 : index
    %c0_106 = arith.constant 0 : index
    %241 = vector.load %arg12[%c0_105, %c0_106] : memref<32x128xf32, #tpu.memory_space<vmem>>, vector<32x128xf32>
    tpu.vector_store %arg12[%c0_105, %c0_106], %240 {strides = array<i32>} : memref<32x128xf32, #tpu.memory_space<vmem>>, vector<32x128xf32>,
    %c3_i32 = arith.constant 3 : i32
    %c0_107 = arith.constant 0 : index
    %c0_108 = arith.constant 0 : index
    %242 = vector.load %arg12[%c0_107, %c0_108] : memref<32x128xf32, #tpu.memory_space<vmem>>, vector<32x128xf32>
    %c0_109 = arith.constant 0 : index
    %c0_110 = arith.constant 0 : index
    %243 = vector.load %arg2[%c0_109, %c0_110] : memref<32x32xbf16, #tpu.memory_space<vmem>>, vector<32x32xbf16>
    %244 = arith.truncf %242 : vector<32x128xf32> to vector<32x128xbf16>
    %cst_111 = arith.constant dense<0.000000e+00> : vector<32x128xf32>
    %245 = tpu.matmul %243, %244, %cst_111 {dimension_numbers = #tpu.dot_dimension_numbers<[1], [0], [0], [1], [0, 0, 1, 1], [], []>} : vector<32x32xbf16>, vector<32x128xbf16>, vector<32x128xf32> -> vector<32x128xf32>
    %c0_112 = arith.constant 0 : index
    %c0_113 = arith.constant 0 : index
    %246 = vector.load %arg3[%c0_112, %c0_113] : memref<32x128xf32, #tpu.memory_space<vmem>>, vector<32x128xf32>
    %247 = arith.addf %245, %246 : vector<32x128xf32>
    %248 = arith.index_cast %c3_i32 : i32 to index
    %249 = memref.load %arg0[%248] : memref<5xf32, #tpu.memory_space<smem>>
    %250 = vector.broadcast %249 : f32 to vector<32x128xf32>
    %251 = arith.mulf %250, %242 : vector<32x128xf32>
    %252 = arith.addf %251, %247 : vector<32x128xf32>
    %253 = arith.truncf %252 : vector<32x128xf32> to vector<32x128xbf16>
    %254 = arith.index_cast %c3_i32 : i32 to index
    %c0_114 = arith.constant 0 : index
    %c0_115 = arith.constant 0 : index
    %255 = vector.load %arg4[%254, %c0_114, %c0_115] : memref<5x128x128xbf16, #tpu.memory_space<vmem>>, vector<1x128x128xbf16>
    %256 = vector.shape_cast %255 : vector<1x128x128xbf16> to vector<128x128xbf16>
    %cst_116 = arith.constant dense<0.000000e+00> : vector<32x128xf32>
    %257 = tpu.matmul %253, %256, %cst_116 {dimension_numbers = #tpu.dot_dimension_numbers<[1], [0], [0], [1], [0, 0, 1, 1], [], []>} : vector<32x128xbf16>, vector<128x128xbf16>, vector<32x128xf32> -> vector<32x128xf32>
    %258 = arith.index_cast %c3_i32 : i32 to index
    %c0_117 = arith.constant 0 : index
    %c0_118 = arith.constant 0 : index
    %259 = vector.load %arg5[%258, %c0_117, %c0_118] : memref<5x1x128xf32, #tpu.memory_space<vmem>>, vector<1x1x128xf32>
    %260 = vector.shape_cast %259 : vector<1x1x128xf32> to vector<1x128xf32>
    %261 = arith.index_cast %c3_i32 : i32 to index
    %c0_119 = arith.constant 0 : index
    %c0_120 = arith.constant 0 : index
    %262 = vector.load %arg6[%261, %c0_119, %c0_120] : memref<5x1x128xf32, #tpu.memory_space<vmem>>, vector<1x1x128xf32>
    %263 = vector.shape_cast %262 : vector<1x1x128xf32> to vector<1x128xf32>
    %cst_121 = arith.constant dense<0.000000e+00> : vector<128xf32>
    %264 = vector.multi_reduction <add>, %257, %cst_121 [0] : vector<32x128xf32> to vector<128xf32>
    %265 = vector.shape_cast %264 : vector<128xf32> to vector<1x128xf32>
    %cst_122 = arith.constant 3.200000e+01 : f32
    %266 = vector.broadcast %cst_122 : f32 to vector<1x128xf32>
    %267 = arith.divf %265, %266 : vector<1x128xf32>
    %268 = arith.mulf %257, %257 : vector<32x128xf32>
    %cst_123 = arith.constant dense<0.000000e+00> : vector<128xf32>
    %269 = vector.multi_reduction <add>, %268, %cst_123 [0] : vector<32x128xf32> to vector<128xf32>
    %270 = vector.shape_cast %269 : vector<128xf32> to vector<1x128xf32>
    %cst_124 = arith.constant 3.200000e+01 : f32
    %271 = vector.broadcast %cst_124 : f32 to vector<1x128xf32>
    %272 = arith.divf %270, %271 : vector<1x128xf32>
    %273 = arith.mulf %267, %267 : vector<1x128xf32>
    %274 = arith.subf %272, %273 : vector<1x128xf32>
    %cst_125 = arith.constant 9.99999974E-6 : f32
    %275 = vector.broadcast %cst_125 : f32 to vector<1x128xf32>
    %276 = arith.addf %274, %275 : vector<1x128xf32>
    %277 = math.rsqrt %276 : vector<1x128xf32>
    %278 = arith.mulf %260, %277 : vector<1x128xf32>
    %279 = arith.mulf %267, %278 : vector<1x128xf32>
    %280 = arith.subf %263, %279 : vector<1x128xf32>
    %281 = vector.broadcast %278 : vector<1x128xf32> to vector<32x128xf32>
    %282 = arith.mulf %257, %281 : vector<32x128xf32>
    %283 = vector.broadcast %280 : vector<1x128xf32> to vector<32x128xf32>
    %284 = arith.addf %282, %283 : vector<32x128xf32>
    %cst_126 = arith.constant 0.000000e+00 : f32
    %285 = vector.broadcast %cst_126 : f32 to vector<32x128xf32>
    %286 = arith.maximumf %284, %285 : vector<32x128xf32>
    %287 = arith.truncf %286 : vector<32x128xf32> to vector<32x128xbf16>
    %288 = arith.index_cast %c3_i32 : i32 to index
    %c0_127 = arith.constant 0 : index
    %c0_128 = arith.constant 0 : index
    %289 = vector.load %arg7[%288, %c0_127, %c0_128] : memref<5x128x128xbf16, #tpu.memory_space<vmem>>, vector<1x128x128xbf16>
    %290 = vector.shape_cast %289 : vector<1x128x128xbf16> to vector<128x128xbf16>
    %cst_129 = arith.constant dense<0.000000e+00> : vector<32x128xf32>
    %291 = tpu.matmul %287, %290, %cst_129 {dimension_numbers = #tpu.dot_dimension_numbers<[1], [0], [0], [1], [0, 0, 1, 1], [], []>} : vector<32x128xbf16>, vector<128x128xbf16>, vector<32x128xf32> -> vector<32x128xf32>
    %292 = arith.index_cast %c3_i32 : i32 to index
    %c0_130 = arith.constant 0 : index
    %c0_131 = arith.constant 0 : index
    %293 = vector.load %arg8[%292, %c0_130, %c0_131] : memref<5x1x128xf32, #tpu.memory_space<vmem>>, vector<1x1x128xf32>
    %294 = vector.shape_cast %293 : vector<1x1x128xf32> to vector<1x128xf32>
    %295 = arith.index_cast %c3_i32 : i32 to index
    %c0_132 = arith.constant 0 : index
    %c0_133 = arith.constant 0 : index
    %296 = vector.load %arg9[%295, %c0_132, %c0_133] : memref<5x1x128xf32, #tpu.memory_space<vmem>>, vector<1x1x128xf32>
    %297 = vector.shape_cast %296 : vector<1x1x128xf32> to vector<1x128xf32>
    %cst_134 = arith.constant dense<0.000000e+00> : vector<128xf32>
    %298 = vector.multi_reduction <add>, %291, %cst_134 [0] : vector<32x128xf32> to vector<128xf32>
    %299 = vector.shape_cast %298 : vector<128xf32> to vector<1x128xf32>
    %cst_135 = arith.constant 3.200000e+01 : f32
    %300 = vector.broadcast %cst_135 : f32 to vector<1x128xf32>
    %301 = arith.divf %299, %300 : vector<1x128xf32>
    %302 = arith.mulf %291, %291 : vector<32x128xf32>
    %cst_136 = arith.constant dense<0.000000e+00> : vector<128xf32>
    %303 = vector.multi_reduction <add>, %302, %cst_136 [0] : vector<32x128xf32> to vector<128xf32>
    %304 = vector.shape_cast %303 : vector<128xf32> to vector<1x128xf32>
    %cst_137 = arith.constant 3.200000e+01 : f32
    %305 = vector.broadcast %cst_137 : f32 to vector<1x128xf32>
    %306 = arith.divf %304, %305 : vector<1x128xf32>
    %307 = arith.mulf %301, %301 : vector<1x128xf32>
    %308 = arith.subf %306, %307 : vector<1x128xf32>
    %cst_138 = arith.constant 9.99999974E-6 : f32
    %309 = vector.broadcast %cst_138 : f32 to vector<1x128xf32>
    %310 = arith.addf %308, %309 : vector<1x128xf32>
    %311 = math.rsqrt %310 : vector<1x128xf32>
    %312 = arith.mulf %294, %311 : vector<1x128xf32>
    %313 = arith.mulf %301, %312 : vector<1x128xf32>
    %314 = arith.subf %297, %313 : vector<1x128xf32>
    %315 = vector.broadcast %312 : vector<1x128xf32> to vector<32x128xf32>
    %316 = arith.mulf %291, %315 : vector<32x128xf32>
    %317 = vector.broadcast %314 : vector<1x128xf32> to vector<32x128xf32>
    %318 = arith.addf %316, %317 : vector<32x128xf32>
    %cst_139 = arith.constant 0.000000e+00 : f32
    %319 = vector.broadcast %cst_139 : f32 to vector<32x128xf32>
    %320 = arith.maximumf %318, %319 : vector<32x128xf32>
    %c0_140 = arith.constant 0 : index
    %c0_141 = arith.constant 0 : index
    %321 = vector.load %arg12[%c0_140, %c0_141] : memref<32x128xf32, #tpu.memory_space<vmem>>, vector<32x128xf32>
    tpu.vector_store %arg12[%c0_140, %c0_141], %320 {strides = array<i32>} : memref<32x128xf32, #tpu.memory_space<vmem>>, vector<32x128xf32>,
    %c4_i32 = arith.constant 4 : i32
    %c0_142 = arith.constant 0 : index
    %c0_143 = arith.constant 0 : index
    %322 = vector.load %arg12[%c0_142, %c0_143] : memref<32x128xf32, #tpu.memory_space<vmem>>, vector<32x128xf32>
    %c0_144 = arith.constant 0 : index
    %c0_145 = arith.constant 0 : index
    %323 = vector.load %arg2[%c0_144, %c0_145] : memref<32x32xbf16, #tpu.memory_space<vmem>>, vector<32x32xbf16>
    %324 = arith.truncf %322 : vector<32x128xf32> to vector<32x128xbf16>
    %cst_146 = arith.constant dense<0.000000e+00> : vector<32x128xf32>
    %325 = tpu.matmul %323, %324, %cst_146 {dimension_numbers = #tpu.dot_dimension_numbers<[1], [0], [0], [1], [0, 0, 1, 1], [], []>} : vector<32x32xbf16>, vector<32x128xbf16>, vector<32x128xf32> -> vector<32x128xf32>
    %c0_147 = arith.constant 0 : index
    %c0_148 = arith.constant 0 : index
    %326 = vector.load %arg3[%c0_147, %c0_148] : memref<32x128xf32, #tpu.memory_space<vmem>>, vector<32x128xf32>
    %327 = arith.addf %325, %326 : vector<32x128xf32>
    %328 = arith.index_cast %c4_i32 : i32 to index
    %329 = memref.load %arg0[%328] : memref<5xf32, #tpu.memory_space<smem>>
    %330 = vector.broadcast %329 : f32 to vector<32x128xf32>
    %331 = arith.mulf %330, %322 : vector<32x128xf32>
    %332 = arith.addf %331, %327 : vector<32x128xf32>
    %333 = arith.truncf %332 : vector<32x128xf32> to vector<32x128xbf16>
    %334 = arith.index_cast %c4_i32 : i32 to index
    %c0_149 = arith.constant 0 : index
    %c0_150 = arith.constant 0 : index
    %335 = vector.load %arg4[%334, %c0_149, %c0_150] : memref<5x128x128xbf16, #tpu.memory_space<vmem>>, vector<1x128x128xbf16>
    %336 = vector.shape_cast %335 : vector<1x128x128xbf16> to vector<128x128xbf16>
    %cst_151 = arith.constant dense<0.000000e+00> : vector<32x128xf32>
    %337 = tpu.matmul %333, %336, %cst_151 {dimension_numbers = #tpu.dot_dimension_numbers<[1], [0], [0], [1], [0, 0, 1, 1], [], []>} : vector<32x128xbf16>, vector<128x128xbf16>, vector<32x128xf32> -> vector<32x128xf32>
    %338 = arith.index_cast %c4_i32 : i32 to index
    %c0_152 = arith.constant 0 : index
    %c0_153 = arith.constant 0 : index
    %339 = vector.load %arg5[%338, %c0_152, %c0_153] : memref<5x1x128xf32, #tpu.memory_space<vmem>>, vector<1x1x128xf32>
    %340 = vector.shape_cast %339 : vector<1x1x128xf32> to vector<1x128xf32>
    %341 = arith.index_cast %c4_i32 : i32 to index
    %c0_154 = arith.constant 0 : index
    %c0_155 = arith.constant 0 : index
    %342 = vector.load %arg6[%341, %c0_154, %c0_155] : memref<5x1x128xf32, #tpu.memory_space<vmem>>, vector<1x1x128xf32>
    %343 = vector.shape_cast %342 : vector<1x1x128xf32> to vector<1x128xf32>
    %cst_156 = arith.constant dense<0.000000e+00> : vector<128xf32>
    %344 = vector.multi_reduction <add>, %337, %cst_156 [0] : vector<32x128xf32> to vector<128xf32>
    %345 = vector.shape_cast %344 : vector<128xf32> to vector<1x128xf32>
    %cst_157 = arith.constant 3.200000e+01 : f32
    %346 = vector.broadcast %cst_157 : f32 to vector<1x128xf32>
    %347 = arith.divf %345, %346 : vector<1x128xf32>
    %348 = arith.mulf %337, %337 : vector<32x128xf32>
    %cst_158 = arith.constant dense<0.000000e+00> : vector<128xf32>
    %349 = vector.multi_reduction <add>, %348, %cst_158 [0] : vector<32x128xf32> to vector<128xf32>
    %350 = vector.shape_cast %349 : vector<128xf32> to vector<1x128xf32>
    %cst_159 = arith.constant 3.200000e+01 : f32
    %351 = vector.broadcast %cst_159 : f32 to vector<1x128xf32>
    %352 = arith.divf %350, %351 : vector<1x128xf32>
    %353 = arith.mulf %347, %347 : vector<1x128xf32>
    %354 = arith.subf %352, %353 : vector<1x128xf32>
    %cst_160 = arith.constant 9.99999974E-6 : f32
    %355 = vector.broadcast %cst_160 : f32 to vector<1x128xf32>
    %356 = arith.addf %354, %355 : vector<1x128xf32>
    %357 = math.rsqrt %356 : vector<1x128xf32>
    %358 = arith.mulf %340, %357 : vector<1x128xf32>
    %359 = arith.mulf %347, %358 : vector<1x128xf32>
    %360 = arith.subf %343, %359 : vector<1x128xf32>
    %361 = vector.broadcast %358 : vector<1x128xf32> to vector<32x128xf32>
    %362 = arith.mulf %337, %361 : vector<32x128xf32>
    %363 = vector.broadcast %360 : vector<1x128xf32> to vector<32x128xf32>
    %364 = arith.addf %362, %363 : vector<32x128xf32>
    %cst_161 = arith.constant 0.000000e+00 : f32
    %365 = vector.broadcast %cst_161 : f32 to vector<32x128xf32>
    %366 = arith.maximumf %364, %365 : vector<32x128xf32>
    %367 = arith.truncf %366 : vector<32x128xf32> to vector<32x128xbf16>
    %368 = arith.index_cast %c4_i32 : i32 to index
    %c0_162 = arith.constant 0 : index
    %c0_163 = arith.constant 0 : index
    %369 = vector.load %arg7[%368, %c0_162, %c0_163] : memref<5x128x128xbf16, #tpu.memory_space<vmem>>, vector<1x128x128xbf16>
    %370 = vector.shape_cast %369 : vector<1x128x128xbf16> to vector<128x128xbf16>
    %cst_164 = arith.constant dense<0.000000e+00> : vector<32x128xf32>
    %371 = tpu.matmul %367, %370, %cst_164 {dimension_numbers = #tpu.dot_dimension_numbers<[1], [0], [0], [1], [0, 0, 1, 1], [], []>} : vector<32x128xbf16>, vector<128x128xbf16>, vector<32x128xf32> -> vector<32x128xf32>
    %372 = arith.index_cast %c4_i32 : i32 to index
    %c0_165 = arith.constant 0 : index
    %c0_166 = arith.constant 0 : index
    %373 = vector.load %arg8[%372, %c0_165, %c0_166] : memref<5x1x128xf32, #tpu.memory_space<vmem>>, vector<1x1x128xf32>
    %374 = vector.shape_cast %373 : vector<1x1x128xf32> to vector<1x128xf32>
    %375 = arith.index_cast %c4_i32 : i32 to index
    %c0_167 = arith.constant 0 : index
    %c0_168 = arith.constant 0 : index
    %376 = vector.load %arg9[%375, %c0_167, %c0_168] : memref<5x1x128xf32, #tpu.memory_space<vmem>>, vector<1x1x128xf32>
    %377 = vector.shape_cast %376 : vector<1x1x128xf32> to vector<1x128xf32>
    %cst_169 = arith.constant dense<0.000000e+00> : vector<128xf32>
    %378 = vector.multi_reduction <add>, %371, %cst_169 [0] : vector<32x128xf32> to vector<128xf32>
    %379 = vector.shape_cast %378 : vector<128xf32> to vector<1x128xf32>
    %cst_170 = arith.constant 3.200000e+01 : f32
    %380 = vector.broadcast %cst_170 : f32 to vector<1x128xf32>
    %381 = arith.divf %379, %380 : vector<1x128xf32>
    %382 = arith.mulf %371, %371 : vector<32x128xf32>
    %cst_171 = arith.constant dense<0.000000e+00> : vector<128xf32>
    %383 = vector.multi_reduction <add>, %382, %cst_171 [0] : vector<32x128xf32> to vector<128xf32>
    %384 = vector.shape_cast %383 : vector<128xf32> to vector<1x128xf32>
    %cst_172 = arith.constant 3.200000e+01 : f32
    %385 = vector.broadcast %cst_172 : f32 to vector<1x128xf32>
    %386 = arith.divf %384, %385 : vector<1x128xf32>
    %387 = arith.mulf %381, %381 : vector<1x128xf32>
    %388 = arith.subf %386, %387 : vector<1x128xf32>
    %cst_173 = arith.constant 9.99999974E-6 : f32
    %389 = vector.broadcast %cst_173 : f32 to vector<1x128xf32>
    %390 = arith.addf %388, %389 : vector<1x128xf32>
    %391 = math.rsqrt %390 : vector<1x128xf32>
    %392 = arith.mulf %374, %391 : vector<1x128xf32>
    %393 = arith.mulf %381, %392 : vector<1x128xf32>
    %394 = arith.subf %377, %393 : vector<1x128xf32>
    %395 = vector.broadcast %392 : vector<1x128xf32> to vector<32x128xf32>
    %396 = arith.mulf %371, %395 : vector<32x128xf32>
    %397 = vector.broadcast %394 : vector<1x128xf32> to vector<32x128xf32>
    %398 = arith.addf %396, %397 : vector<32x128xf32>
    %cst_174 = arith.constant 0.000000e+00 : f32
    %399 = vector.broadcast %cst_174 : f32 to vector<32x128xf32>
    %400 = arith.maximumf %398, %399 : vector<32x128xf32>
    %c0_175 = arith.constant 0 : index
    %c0_176 = arith.constant 0 : index
    %401 = vector.load %arg12[%c0_175, %c0_176] : memref<32x128xf32, #tpu.memory_space<vmem>>, vector<32x128xf32>
    tpu.vector_store %arg12[%c0_175, %c0_176], %400 {strides = array<i32>} : memref<32x128xf32, #tpu.memory_space<vmem>>, vector<32x128xf32>,
    %c5_i32 = arith.constant 5 : i32
    %c0_177 = arith.constant 0 : index
    %c0_178 = arith.constant 0 : index
    %402 = vector.load %arg10[%c0_177, %c0_178] : memref<4x32xf32, #tpu.memory_space<vmem>>, vector<4x32xf32>
    %c0_179 = arith.constant 0 : index
    %c0_180 = arith.constant 0 : index
    %403 = vector.load %arg12[%c0_179, %c0_180] : memref<32x128xf32, #tpu.memory_space<vmem>>, vector<32x128xf32>
    %cst_181 = arith.constant dense<0.000000e+00> : vector<4x128xf32>
    %404 = tpu.matmul %402, %403, %cst_181 {dimension_numbers = #tpu.dot_dimension_numbers<[1], [0], [0], [1], [0, 0, 1, 1], [], []>} : vector<4x32xf32>, vector<32x128xf32>, vector<4x128xf32> -> vector<4x128xf32>
    %c0_182 = arith.constant 0 : index
    %c0_183 = arith.constant 0 : index
    %405 = vector.load %arg11[%c0_182, %c0_183] : memref<4x128xf32, #tpu.memory_space<vmem>>, vector<4x128xf32>
    tpu.vector_store %arg11[%c0_182, %c0_183], %404 {strides = array<i32>} : memref<4x128xf32, #tpu.memory_space<vmem>>, vector<4x128xf32>,
    return
  }
}

</mosaic_0001>

<bundles_post_ra>
// kernel: gin_forward.1
= control target key start
LH: loop header
LB: loop body
LE: loop exit
PB: predicated region body
PF: predicated region fallthrough
CT: control target
= control target key end

     0   :  { %16 = vsyncpa [#allocation4], 0  ;;  %s3622_s0 = inlined_call_operand.vmem [shape: f32[5], index: 0, kind: input, shape index: {}]   ;;  %s3623_s1 = inlined_call_operand.vmem [shape: f32[32,128], index: 1, kind: input, shape index: {}]   ;;  %s3624_s2 = inlined_call_operand.vmem [shape: bf16[32,32], index: 2, kind: input, shape index: {}]   ;;  %s3625_s3 = inlined_call_operand.vmem [shape: f32[32,128], index: 3, kind: input, shape index: {}]   ;;  %s3626_s4 = inlined_call_operand.vmem [shape: bf16[5,128,128], index: 4, kind: input, shape index: {}]   ;;  %s3627_s5 = inlined_call_operand.vmem [shape: f32[5,1,128], index: 5, kind: input, shape index: {}]   ;;  %s3628_s6 = inlined_call_operand.vmem [shape: f32[5,1,128], index: 6, kind: input, shape index: {}]   ;;  %s3629_s7 = inlined_call_operand.vmem [shape: bf16[5,128,128], index: 7, kind: input, shape index: {}]   ;;  %s3630_s8 = inlined_call_operand.vmem [shape: f32[5,1,128], index: 8, kind: input, shape index: {}]   ;;  %s3631_s9 = inlined_call_operand.vmem [shape: f32[5,1,128], index: 9, kind: input, shape index: {}]   ;;  %s3632_s10 = inlined_call_operand.vmem [shape: f32[4,32], index: 10, kind: input, shape index: {}]   ;;  %s3633_s11 = inlined_call_operand.vmem [shape: f32[4,128], index: 11, kind: output, shape index: {}]  }
   0x1   :  { %s23_s19 = sshll.u32 %s3622_s0, 4  ;;  %s24_s19 = int_to_ptr.vmem [resolvable:$true] %s23_s19 }
   0x2   :  { %s3100_s20 = scalar_lea.vmem %s24_s19, 16  ;;  %p3105_p1 = scmp.lt.s32.totalorder %s24_s19, %s24_s19 }
   0x3   :  { %p3101_p0 = scmp.ne.s32.totalorder %s24_s19, %s3100_s20  ;;  %p3106_p2 = scmp.lt.s32.totalorder %s3100_s20, %s3100_s20 }
   0x5   :  { %p3107_p3 = por %p3106_p2, %p3105_p1 }
   0x7   :  { %p3108_p4 = pnand %p3107_p3, %p3101_p0 }
   0x9   :  { %3111 = shalt.err (!%p3108_p4)
}
   0xa   :  { %s3114_s21 = smov [#allocation3]  }
   0xb   :  { %26 = dma.vmem_to_smem %s24_s19, 16, %s3114_s21, [#allocation4]  }
   0xc   :  { %3112 = dma.done.wait [#allocation4], 16  }
   0xd   :  { %3113 = vsyncadd [#allocation4], 4294967280 }
   0xe   :  { %50 = sfence }
   0xf   :  { %v52_v0 = vld [vmem:[%s3623_s1] sm:$0xff]  ;;  %v53_v1 = vld [vmem:[%s3623_s1 + $0x8] sm:$0xff]  ;;  %v54_v2 = vld [vmem:[%s3623_s1 + $0x10] sm:$0xff]  ;;  %vm84_vm0 = vcmask 261120   ;;  %s140_s28 = sld [smem:[#allocation3]]  ;;  %s2379_s19 = sld [smem:[#allocation3 + $0x1]] }
  0x10   :  { %v68_v3 = vpack.c.bf16 %v53_v1, %v52_v0  ;;  %v55_v4 = vld [vmem:[%s3623_s1 + $0x18] sm:$0xff]  ;;  %v2990_v6 = vld [vmem:[%s3624_s2] sm:$0xff]   ;;  %v2993_v8 = vld [vmem:[%s3626_s4 + $0x8] sm:$0xff]   ;;  %s2436_s22 = sld [smem:[#allocation3 + $0x2]]  ;;  %s2493_s25 = sld [smem:[#allocation3 + $0x3]]  ;;  %vm3116_vm1 = vmmov 0  }
  0x11   :  { %v69_v5 = vpack.c.bf16 %v55_v4, %v54_v2  ;;  %2733 = vmatprep.mubr.msk.bf16.mxu0 %vm84_vm0, %v2990_v6  ;;  %v2992_v7 = vld [vmem:[%s3626_s4] sm:$0xff]   ;;  %v2991_v9 = vld [vmem:[%s3624_s2 + $0x8] sm:$0xff]   ;;  %v2994_v10 = vld [vmem:[%s3626_s4 + $0x10] sm:$0xff]  }
  0x12   :  { %2729 = vmatprep.subr.bf16.mxu0 %v68_v3  ;;  %2737 = vmatprep.subr.bf16.mxu1 %v2992_v7  ;;  %v2995_v11 = vld [vmem:[%s3626_s4 + $0x18] sm:$0xff]   ;;  %v2996_v12 = vld [vmem:[%s3626_s4 + $0x20] sm:$0xff]   ;;  %v2997_v13 = vld [vmem:[%s3626_s4 + $0x28] sm:$0xff]  }
  0x13   :  { %2730 = vmatpush3.bf16.msra.mxu0 %v68_v3  ;;  %2738 = vmatpush3.bf16.msra.mxu1 %v2992_v7  ;;  %v2998_v14 = vld [vmem:[%s3626_s4 + $0x30] sm:$0xff]   ;;  %v2999_v15 = vld [vmem:[%s3626_s4 + $0x38] sm:$0xff]   ;;  %v3233_v18 = vld [vmem:[%s3625_s3] sm:$0xff] }
  0x14   :  { %2731 = vmatprep.subr.bf16.mxu0 %v69_v5  ;;  %2739 = vmatprep.subr.bf16.mxu1 %v2993_v8  ;;  %v3228_v17 = vld [vmem:[%s3625_s3 + $0x10] sm:$0xff]  ;;  %v3238_v21 = vld [vmem:[%s3625_s3 + $0x18] sm:$0xff]  ;;  %v3244_v26 = vld [vmem:[%s3625_s3 + $0x8] sm:$0xff] }
  0x15   :  { %v141_v16 = vstv %s140_s28  ;;  %v3000_v39 = vld [vmem:[%s3629_s7] sm:$0xff]   ;;  %v3001_v40 = vld [vmem:[%s3629_s7 + $0x8] sm:$0xff]   ;;  %v3002_v41 = vld [vmem:[%s3629_s7 + $0x10] sm:$0xff]  }
  0x16   :  { %v142_v19 = vmul.f32 %v141_v16, %v52_v0  ;;  %v144_v23 = vmul.f32 %v141_v16, %v54_v2  ;;  %v145_v25 = vmul.f32 %v141_v16, %v55_v4  ;;  %v143_v27 = vmul.f32 %v141_v16, %v53_v1  ;;  %v3003_v42 = vld [vmem:[%s3629_s7 + $0x18] sm:$0xff]   ;;  %v3004_v43 = vld [vmem:[%s3629_s7 + $0x20] sm:$0xff]   ;;  %v3005_v44 = vld [vmem:[%s3629_s7 + $0x28] sm:$0xff]  }
  0x17   :  { %2732 = vmatpush3.bf16.msra.mxu0 %v69_v5  ;;  %2740 = vmatpush3.bf16.msra.mxu1 %v2993_v8  ;;  %v3006_v45 = vld [vmem:[%s3629_s7 + $0x30] sm:$0xff]   ;;  %v3007_v46 = vld [vmem:[%s3629_s7 + $0x38] sm:$0xff]   ;;  %v265_v16 = vld [vmem:[%s3627_s5] sm:$0x1] }
  0x18   :  { %2741 = vmatprep.subr.bf16.mxu1 %v2994_v10  ;;  %2757 = vmatprep.subr.bf16.mxu0 %v3000_v39 }
  0x1a   :  { %2734 = vmatmul.mubr.msk.bf16.vlgmr.msra.gmra.mrb[0].mxu0 %vm84_vm0, %v2991_v9 }
  0x1b   :  { %2742 = vmatpush3.bf16.msra.mxu1 %v2994_v10  ;;  %2758 = vmatpush3.bf16.msra.mxu0 %v3000_v39 }
  0x1c   :  { %2743 = vmatprep.subr.bf16.mxu1 %v2995_v11  ;;  %2759 = vmatprep.subr.bf16.mxu0 %v3001_v40 }
  0x1f   :  { %2744 = vmatpush3.bf16.msra.mxu1 %v2995_v11  ;;  %2760 = vmatpush3.bf16.msra.mxu0 %v3001_v40 }
  0x20   :  { %2745 = vmatprep.subr.bf16.mxu1 %v2996_v12  ;;  %2761 = vmatprep.subr.bf16.mxu0 %v3002_v41 }
  0x23   :  { %2746 = vmatpush3.bf16.msra.mxu1 %v2996_v12  ;;  %2762 = vmatpush3.bf16.msra.mxu0 %v3002_v41 }
  0x24   :  { %2747 = vmatprep.subr.bf16.mxu1 %v2997_v13  ;;  %2763 = vmatprep.subr.bf16.mxu0 %v3003_v42 }
  0x27   :  { %2748 = vmatpush3.bf16.msra.mxu1 %v2997_v13  ;;  %2764 = vmatpush3.bf16.msra.mxu0 %v3003_v42 }
  0x28   :  { %2749 = vmatprep.subr.bf16.mxu1 %v2998_v14  ;;  %2765 = vmatprep.subr.bf16.mxu0 %v3004_v43 }
  0x2b   :  { %2750 = vmatpush3.bf16.msra.mxu1 %v2998_v14  ;;  %2766 = vmatpush3.bf16.msra.mxu0 %v3004_v43  ;;  %v300_v14 = vlaneseq  ;;  %v3008_v43 = vld [vmem:[%s3624_s2] sm:$0xff]  }
  0x2c   :  { %2751 = vmatprep.subr.bf16.mxu1 %v2999_v15  ;;  %2767 = vmatprep.subr.bf16.mxu0 %v3005_v44 }
  0x2f   :  { %2752 = vmatpush3.bf16.msra.mxu1 %v2999_v15  ;;  %2768 = vmatpush3.bf16.msra.mxu0 %v3005_v44  ;;  %v301_v15 = vshrl.u32 %v300_v14, 7  ;;  %v3010_v44 = vld [vmem:[%s3626_s4 + $0x40] sm:$0xff]  }
  0x30   :  { %2769 = vmatprep.subr.bf16.mxu0 %v3006_v45 }
  0x33   :  { %2770 = vmatpush3.bf16.msra.mxu0 %v3006_v45  ;;  %v3011_v45 = vld [vmem:[%s3626_s4 + $0x48] sm:$0xff]  }
  0x34   :  { %2771 = vmatprep.subr.bf16.mxu0 %v3007_v46 }
  0x37   :  { %2772 = vmatpush3.bf16.msra.mxu0 %v3007_v46  ;;  %v3012_v46 = vld [vmem:[%s3626_s4 + $0x50] sm:$0xff]  }
  0x38   :  { %2785 = vmatprep.subr.bf16.mxu0 %v3010_v44 }
  0xed   :  { %v2735_v20 = vpop.f32.mrb[0].mxu0 }
  0xee   :  { %v134_v22 = vadd.f32 %v2735_v20, %v3228_v17  ;;  %v125_v24 = vpop.f32.mrb[1].mxu0 }
  0xef   :  { %v126_v28 = vadd.f32 %v125_v24, %v3233_v18  ;;  %v2736_v29 = vpop.f32.mrb[2].mxu0 }
  0xf0   :  { %v137_v30 = vadd.f32 %v2736_v29, %v3238_v21  ;;  %v128_v31 = vpop.f32.mrb[3].mxu0  ;;  %v148_v34 = vadd.f32 %v144_v23, %v134_v22  ;;  %v266_v23 = vld [vmem:[%s3628_s6] sm:$0x1] }
  0xf1   :  { %v129_v32 = vadd.f32 %v128_v31, %v3244_v26  ;;  %v146_v33 = vadd.f32 %v142_v19, %v126_v28  ;;  %v3276_v19 = vsub.s32 0, %v301_v15 }
  0xf2   :  { %v149_v35 = vadd.f32 %v145_v25, %v137_v30 }
  0xf3   :  { %v147_v36 = vadd.f32 %v143_v27, %v129_v32 }
  0xf4   :  { %v151_v37 = vpack.c.bf16 %v149_v35, %v148_v34 }
  0xf5   :  { %v150_v38 = vpack.c.bf16 %v147_v36, %v146_v33 }
  0xf7   :  { %2753 = vmatprep.mubr.bf16.mxu1 %v150_v38 }
  0xf8   :  { %2754 = vmatmul.mubr.bf16.vlgmr.msra.gmra.mrb[0].mxu1 %v151_v37 }
  0xf9   :  { %2781 = vmatprep.mubr.msk.bf16.mxu1 %vm84_vm0, %v3008_v43 }
 0x1cb   :  { %v2755_v47 = vpop.f32.mrb[0].mxu1 }
 0x1cc   :  { %v250_v48 = vpop.f32.mrb[1].mxu1  ;;  %v280_v54 = vmul.f32 %v2755_v47, %v2755_v47 }
 0x1cd   :  { %v2756_v49 = vpop.f32.mrb[2].mxu1  ;;  %v278_v51 = vmul.f32 %v250_v48, %v250_v48 }
 0x1ce   :  { %v253_v50 = vpop.f32.mrb[3].mxu1  ;;  %v281_v57 = vmul.f32 %v2756_v49, %v2756_v49 }
 0x1cf   :  { %v267_v52 = vadd.f32 %v253_v50, %v250_v48  ;;  %v279_v53 = vmul.f32 %v253_v50, %v253_v50 }
 0x1d1   :  { %v268_v55 = vadd.f32 %v2755_v47, %v267_v52  ;;  %v282_v56 = vadd.f32 %v279_v53, %v278_v51 }
 0x1d3   :  { %v269_v58 = vadd.f32 %v2756_v49, %v268_v55  ;;  %v283_v59 = vadd.f32 %v282_v56, %v280_v54 }
 0x1d5   :  { %v270_v60 = vrot.slane %v269_v58, 4  ;;  %v284_v61 = vadd.f32 %v283_v59, %v281_v57 }
 0x1d7   :  { %v271_v62 = vadd.f32 %v270_v60, %v269_v58  ;;  %v285_v63 = vrot.slane %v284_v61, 4 }
 0x1d9   :  { %v272_v0 = vrot.slane %v271_v62, 2  ;;  %v286_v1 = vadd.f32 %v285_v63, %v284_v61 }
 0x1db   :  { %v273_v2 = vadd.f32 %v272_v0, %v271_v62  ;;  %v287_v3 = vrot.slane %v286_v1, 2 }
 0x1dd   :  { %v274_v4 = vrot.slane %v273_v2, 1  ;;  %v288_v5 = vadd.f32 %v287_v3, %v286_v1 }
 0x1df   :  { %v275_v6 = vadd.f32 %v274_v4, %v273_v2  ;;  %v289_v7 = vrot.slane %v288_v5, 1 }
 0x1e1   :  { %v277_v8 = vmul.f32 0.03125, %v275_v6  ;;  %v290_v9 = vadd.f32 %v289_v7, %v288_v5 }
 0x1e3   :  { %v291_v10 = vmul.f32 0.03125, %v290_v9  ;;  %v292_v11 = vmul.f32 %v277_v8, %v277_v8 }
 0x1e5   :  { %v293_v12 = vsub.f32 %v291_v10, %v292_v11 }
 0x1e7   :  { %v294_v13 = vadd.f32 1e-05, %v293_v12 }
 0x1e9   :  { %3080 = vrsqrt.f32 %v294_v13 }
 0x1f3   :  { %v3081_v20 = vpop.eup %3080 }
 0x1f4   :  { %v296_v22 = vmul.f32 %v3081_v20, %v265_v16  ;;  %v438_v20 = vld [vmem:[%s3630_s8] sm:$0x1] }
 0x1f6   :  { %v297_v24 = vmul.f32 %v296_v22, %v277_v8  ;;  %v303_v25 = vrot.slane %v296_v22, %v3276_v19 }
 0x1f8   :  { %v298_v27 = vsub.f32 %v266_v23, %v297_v24  ;;  %v306_v28 = vmul.f32 %v303_v25, %v253_v50  ;;  %v305_v29 = vmul.f32 %v303_v25, %v250_v48  ;;  %v307_v30 = vmul.f32 %v2755_v47, %v303_v25  ;;  %v3013_v47 = vld [vmem:[%s3626_s4 + $0x58] sm:$0xff]   ;;  %v3014_v48 = vld [vmem:[%s3626_s4 + $0x60] sm:$0xff]  }
 0x1f9   :  { %v308_v31 = vmul.f32 %v2756_v49, %v303_v25  ;;  %v3015_v49 = vld [vmem:[%s3626_s4 + $0x68] sm:$0xff]   ;;  %v439_v24 = vld [vmem:[%s3631_s9] sm:$0x1] }
 0x1fa   :  { %v313_v32 = vrot.slane %v298_v27, %v3276_v19 }
 0x1fc   :  { %v316_v33 = vadd.f32 %v313_v32, %v306_v28  ;;  %v315_v34 = vadd.f32 %v313_v32, %v305_v29  ;;  %v317_v35 = vadd.f32 %v313_v32, %v307_v30  ;;  %v318_v36 = vadd.f32 %v313_v32, %v308_v31 }
 0x1fe   :  { %v319_v37 = vmax.f32 %v315_v34, 0.0  ;;  %v320_v38 = vmax.f32 %v316_v33, 0.0  ;;  %v321_v39 = vmax.f32 %v317_v35, 0.0  ;;  %v322_v40 = vmax.f32 %v318_v36, 0.0 }
 0x200   :  { %v323_v41 = vpack.c.bf16 %v320_v38, %v319_v37  ;;  %v324_v42 = vpack.c.bf16 %v322_v40, %v321_v39 }
 0x202   :  { %2773 = vmatprep.mubr.bf16.mxu0 %v323_v41 }
 0x203   :  { %2774 = vmatmul.mubr.bf16.vlgmr.msra.gmra.mrb[4].mxu0 %v324_v42 }
 0x204   :  { %2786 = vmatpush3.bf16.msra.mxu0 %v3010_v44  ;;  %v3009_v44 = vld [vmem:[%s3624_s2 + $0x8] sm:$0xff]  }
 0x205   :  { %2787 = vmatprep.subr.bf16.mxu0 %v3011_v45 }
 0x208   :  { %2788 = vmatpush3.bf16.msra.mxu0 %v3011_v45  ;;  %v3016_v45 = vld [vmem:[%s3626_s4 + $0x70] sm:$0xff]  }
 0x209   :  { %2789 = vmatprep.subr.bf16.mxu0 %v3012_v46 }
 0x20c   :  { %2790 = vmatpush3.bf16.msra.mxu0 %v3012_v46  ;;  %v3017_v46 = vld [vmem:[%s3626_s4 + $0x78] sm:$0xff]  }
 0x20d   :  { %2791 = vmatprep.subr.bf16.mxu0 %v3013_v47 }
 0x210   :  { %2792 = vmatpush3.bf16.msra.mxu0 %v3013_v47  ;;  %v579_v47 = vstv %s2379_s19 }
 0x211   :  { %2793 = vmatprep.subr.bf16.mxu0 %v3014_v48 }
 0x214   :  { %2794 = vmatpush3.bf16.msra.mxu0 %v3014_v48 }
 0x215   :  { %2795 = vmatprep.subr.bf16.mxu0 %v3015_v49 }
 0x218   :  { %2796 = vmatpush3.bf16.msra.mxu0 %v3015_v49 }
 0x219   :  { %2797 = vmatprep.subr.bf16.mxu0 %v3016_v45 }
 0x21c   :  { %2798 = vmatpush3.bf16.msra.mxu0 %v3016_v45 }
 0x21d   :  { %2799 = vmatprep.subr.bf16.mxu0 %v3017_v46 }
 0x220   :  { %2800 = vmatpush3.bf16.msra.mxu0 %v3017_v46  ;;  %v2404_v46 = vld [vmem:[%s3627_s5 + $0x1] sm:$0x1] }
 0x2d6   :  { %v2775_v50 = vpop.f32.mrb[4].mxu0 }
 0x2d7   :  { %v423_v51 = vpop.f32.mrb[5].mxu0  ;;  %v452_v57 = vmul.f32 %v2775_v50, %v2775_v50 }
 0x2d8   :  { %v2776_v52 = vpop.f32.mrb[6].mxu0  ;;  %v450_v54 = vmul.f32 %v423_v51, %v423_v51 }
 0x2d9   :  { %v426_v53 = vpop.f32.mrb[7].mxu0  ;;  %v453_v60 = vmul.f32 %v2776_v52, %v2776_v52 }
 0x2da   :  { %v440_v55 = vadd.f32 %v426_v53, %v423_v51  ;;  %v451_v56 = vmul.f32 %v426_v53, %v426_v53 }
 0x2dc   :  { %v441_v58 = vadd.f32 %v2775_v50, %v440_v55  ;;  %v454_v59 = vadd.f32 %v451_v56, %v450_v54 }
 0x2de   :  { %v442_v61 = vadd.f32 %v2776_v52, %v441_v58  ;;  %v455_v62 = vadd.f32 %v454_v59, %v452_v57 }
 0x2e0   :  { %v443_v63 = vrot.slane %v442_v61, 4  ;;  %v456_v0 = vadd.f32 %v455_v62, %v453_v60 }
 0x2e2   :  { %v444_v1 = vadd.f32 %v443_v63, %v442_v61  ;;  %v457_v2 = vrot.slane %v456_v0, 4 }
 0x2e4   :  { %v445_v3 = vrot.slane %v444_v1, 2  ;;  %v458_v4 = vadd.f32 %v457_v2, %v456_v0  ;;  %v3018_v2 = vld [vmem:[%s3629_s7 + $0x40] sm:$0xff]  }
 0x2e6   :  { %v446_v5 = vadd.f32 %v445_v3, %v444_v1  ;;  %v459_v6 = vrot.slane %v458_v4, 2  ;;  %v3019_v3 = vld [vmem:[%s3629_s7 + $0x48] sm:$0xff]  }
 0x2e8   :  { %v447_v7 = vrot.slane %v446_v5, 1  ;;  %v460_v8 = vadd.f32 %v459_v6, %v458_v4  ;;  %v3020_v4 = vld [vmem:[%s3629_s7 + $0x50] sm:$0xff]   ;;  %v3022_v6 = vld [vmem:[%s3629_s7 + $0x60] sm:$0xff]  }
 0x2ea   :  { %v448_v9 = vadd.f32 %v447_v7, %v446_v5  ;;  %v461_v10 = vrot.slane %v460_v8, 1  ;;  %v3021_v5 = vld [vmem:[%s3629_s7 + $0x58] sm:$0xff]   ;;  %v3023_v7 = vld [vmem:[%s3629_s7 + $0x68] sm:$0xff]  }
 0x2ec   :  { %v449_v11 = vmul.f32 0.03125, %v448_v9  ;;  %v462_v12 = vadd.f32 %v461_v10, %v460_v8  ;;  %v3024_v8 = vld [vmem:[%s3629_s7 + $0x70] sm:$0xff]   ;;  %v3025_v9 = vld [vmem:[%s3629_s7 + $0x78] sm:$0xff]  }
 0x2ee   :  { %v463_v13 = vmul.f32 0.03125, %v462_v12  ;;  %v464_v14 = vmul.f32 %v449_v11, %v449_v11 }
 0x2f0   :  { %v465_v15 = vsub.f32 %v463_v13, %v464_v14 }
 0x2f2   :  { %v466_v16 = vadd.f32 1e-05, %v465_v15 }
 0x2f4   :  { %3082 = vrsqrt.f32 %v466_v16 }
 0x2fe   :  { %v3083_v22 = vpop.eup %3082 }
 0x2ff   :  { %v468_v23 = vmul.f32 %v3083_v22, %v438_v20 }
 0x301   :  { %v469_v25 = vmul.f32 %v468_v23, %v449_v11  ;;  %v475_v27 = vrot.slane %v468_v23, %v3276_v19 }
 0x303   :  { %v470_v28 = vsub.f32 %v439_v24, %v469_v25  ;;  %v478_v29 = vmul.f32 %v475_v27, %v426_v53  ;;  %v477_v30 = vmul.f32 %v475_v27, %v423_v51  ;;  %v479_v31 = vmul.f32 %v2775_v50, %v475_v27 }
 0x304   :  { %v480_v32 = vmul.f32 %v2776_v52, %v475_v27 }
 0x305   :  { %v485_v33 = vrot.slane %v470_v28, %v3276_v19 }
 0x307   :  { %v488_v34 = vadd.f32 %v485_v33, %v478_v29  ;;  %v487_v35 = vadd.f32 %v485_v33, %v477_v30  ;;  %v489_v36 = vadd.f32 %v485_v33, %v479_v31  ;;  %v490_v37 = vadd.f32 %v485_v33, %v480_v32 }
 0x309   :  { %v491_v38 = vmax.f32 %v487_v35, 0.0  ;;  %v492_v39 = vmax.f32 %v488_v34, 0.0  ;;  %v493_v40 = vmax.f32 %v489_v36, 0.0  ;;  %v494_v41 = vmax.f32 %v490_v37, 0.0 }
 0x30b   :  { %v507_v42 = vpack.c.bf16 %v492_v39, %v491_v38  ;;  %v508_v43 = vpack.c.bf16 %v494_v41, %v493_v40  ;;  %v582_v50 = vmul.f32 %v579_v47, %v493_v40  ;;  %v580_v53 = vmul.f32 %v579_v47, %v491_v38 }
 0x30c   :  { %v583_v57 = vmul.f32 %v579_v47, %v494_v41  ;;  %v581_v61 = vmul.f32 %v579_v47, %v492_v39 }
 0x30d   :  { %2777 = vmatprep.subr.bf16.mxu1 %v507_v42 }
 0x30e   :  { %2778 = vmatpush3.bf16.msra.mxu1 %v507_v42 }
 0x30f   :  { %2779 = vmatprep.subr.bf16.mxu1 %v508_v43 }
 0x312   :  { %2780 = vmatpush3.bf16.msra.mxu1 %v508_v43 }
 0x313   :  { %2805 = vmatprep.subr.bf16.mxu1 %v3018_v2 }
 0x315   :  { %2782 = vmatmul.mubr.msk.bf16.vlgmr.msra.gmra.mrb[4].mxu1 %vm84_vm0, %v3009_v44 }
 0x316   :  { %2806 = vmatpush3.bf16.msra.mxu1 %v3018_v2 }
 0x317   :  { %2807 = vmatprep.subr.bf16.mxu1 %v3019_v3 }
 0x31a   :  { %2808 = vmatpush3.bf16.msra.mxu1 %v3019_v3 }
 0x31b   :  { %2809 = vmatprep.subr.bf16.mxu1 %v3020_v4 }
 0x31e   :  { %2810 = vmatpush3.bf16.msra.mxu1 %v3020_v4  ;;  %v3026_v4 = vld [vmem:[%s3624_s2] sm:$0xff]  }
 0x31f   :  { %2811 = vmatprep.subr.bf16.mxu1 %v3021_v5 }
 0x322   :  { %2812 = vmatpush3.bf16.msra.mxu1 %v3021_v5  ;;  %v3028_v5 = vld [vmem:[%s3626_s4 + $0x80] sm:$0xff]  }
 0x323   :  { %2813 = vmatprep.subr.bf16.mxu1 %v3022_v6 }
 0x326   :  { %2814 = vmatpush3.bf16.msra.mxu1 %v3022_v6  ;;  %v3029_v6 = vld [vmem:[%s3626_s4 + $0x88] sm:$0xff]  }
 0x327   :  { %2815 = vmatprep.subr.bf16.mxu1 %v3023_v7 }
 0x32a   :  { %2816 = vmatpush3.bf16.msra.mxu1 %v3023_v7  ;;  %v3030_v7 = vld [vmem:[%s3626_s4 + $0x90] sm:$0xff]  }
 0x32b   :  { %2817 = vmatprep.subr.bf16.mxu1 %v3024_v8 }
 0x32e   :  { %2818 = vmatpush3.bf16.msra.mxu1 %v3024_v8  ;;  %v3031_v8 = vld [vmem:[%s3626_s4 + $0x98] sm:$0xff]  }
 0x32f   :  { %2819 = vmatprep.subr.bf16.mxu1 %v3025_v9 }
 0x332   :  { %2820 = vmatpush3.bf16.msra.mxu1 %v3025_v9  ;;  %v3032_v9 = vld [vmem:[%s3626_s4 + $0xa0] sm:$0xff]  }
 0x333   :  { %2833 = vmatprep.subr.bf16.mxu1 %v3028_v5 }
 0x3e8   :  { %v2783_v48 = vpop.f32.mrb[4].mxu1 }
 0x3e9   :  { %v572_v49 = vadd.f32 %v2783_v48, %v3228_v17  ;;  %v563_v51 = vpop.f32.mrb[5].mxu1 }
 0x3ea   :  { %v564_v52 = vadd.f32 %v563_v51, %v3233_v18  ;;  %v2784_v54 = vpop.f32.mrb[6].mxu1 }
 0x3eb   :  { %v586_v55 = vadd.f32 %v582_v50, %v572_v49  ;;  %v575_v56 = vadd.f32 %v2784_v54, %v3238_v21  ;;  %v566_v58 = vpop.f32.mrb[7].mxu1  ;;  %v2405_v49 = vld [vmem:[%s3628_s6 + $0x1] sm:$0x1] }
 0x3ec   :  { %v584_v59 = vadd.f32 %v580_v53, %v564_v52  ;;  %v567_v60 = vadd.f32 %v566_v58, %v3244_v26 }
 0x3ed   :  { %v587_v62 = vadd.f32 %v583_v57, %v575_v56 }
 0x3ee   :  { %v585_v63 = vadd.f32 %v581_v61, %v567_v60 }
 0x3ef   :  { %v589_v0 = vpack.c.bf16 %v587_v62, %v586_v55 }
 0x3f0   :  { %v588_v1 = vpack.c.bf16 %v585_v63, %v584_v59 }
 0x3f2   :  { %2801 = vmatprep.mubr.bf16.mxu0 %v588_v1 }
 0x3f3   :  { %2802 = vmatmul.mubr.bf16.vlgmr.msra.gmra.mrb[8].mxu0 %v589_v0 }
 0x3f4   :  { %2829 = vmatprep.mubr.msk.bf16.mxu0 %vm84_vm0, %v3026_v4 }
 0x4c6   :  { %v2803_v10 = vpop.f32.mrb[8].mxu0 }
 0x4c7   :  { %v689_v11 = vpop.f32.mrb[9].mxu0  ;;  %v720_v20 = vmul.f32 %v2803_v10, %v2803_v10 }
 0x4c8   :  { %v2804_v12 = vpop.f32.mrb[10].mxu0  ;;  %v718_v14 = vmul.f32 %v689_v11, %v689_v11 }
 0x4c9   :  { %v692_v13 = vpop.f32.mrb[11].mxu0  ;;  %v721_v24 = vmul.f32 %v2804_v12, %v2804_v12 }
 0x4ca   :  { %v708_v15 = vadd.f32 %v692_v13, %v689_v11  ;;  %v719_v16 = vmul.f32 %v692_v13, %v692_v13 }
 0x4cc   :  { %v709_v22 = vadd.f32 %v2803_v10, %v708_v15  ;;  %v722_v23 = vadd.f32 %v719_v16, %v718_v14 }
 0x4ce   :  { %v710_v25 = vadd.f32 %v2804_v12, %v709_v22  ;;  %v723_v27 = vadd.f32 %v722_v23, %v720_v20 }
 0x4d0   :  { %v711_v28 = vrot.slane %v710_v25, 4  ;;  %v724_v29 = vadd.f32 %v723_v27, %v721_v24 }
 0x4d2   :  { %v712_v30 = vadd.f32 %v711_v28, %v710_v25  ;;  %v725_v31 = vrot.slane %v724_v29, 4 }
 0x4d4   :  { %v713_v32 = vrot.slane %v712_v30, 2  ;;  %v726_v33 = vadd.f32 %v725_v31, %v724_v29 }
 0x4d6   :  { %v714_v34 = vadd.f32 %v713_v32, %v712_v30  ;;  %v727_v35 = vrot.slane %v726_v33, 2 }
 0x4d8   :  { %v715_v36 = vrot.slane %v714_v34, 1  ;;  %v728_v37 = vadd.f32 %v727_v35, %v726_v33 }
 0x4da   :  { %v716_v38 = vadd.f32 %v715_v36, %v714_v34  ;;  %v729_v39 = vrot.slane %v728_v37, 1 }
 0x4dc   :  { %v717_v40 = vmul.f32 0.03125, %v716_v38  ;;  %v730_v41 = vadd.f32 %v729_v39, %v728_v37 }
 0x4de   :  { %v731_v42 = vmul.f32 0.03125, %v730_v41  ;;  %v732_v43 = vmul.f32 %v717_v40, %v717_v40 }
 0x4e0   :  { %v733_v44 = vsub.f32 %v731_v42, %v732_v43 }
 0x4e2   :  { %v734_v45 = vadd.f32 1e-05, %v733_v44 }
 0x4e4   :  { %3084 = vrsqrt.f32 %v734_v45 }
 0x4ee   :  { %v3085_v47 = vpop.eup %3084 }
 0x4ef   :  { %v736_v48 = vmul.f32 %v3085_v47, %v2404_v46  ;;  %v2430_v47 = vld [vmem:[%s3630_s8 + $0x1] sm:$0x1] }
 0x4f1   :  { %v737_v50 = vmul.f32 %v736_v48, %v717_v40  ;;  %v743_v51 = vrot.slane %v736_v48, %v3276_v19 }
 0x4f3   :  { %v738_v52 = vsub.f32 %v2405_v49, %v737_v50  ;;  %v746_v53 = vmul.f32 %v743_v51, %v692_v13  ;;  %v745_v54 = vmul.f32 %v743_v51, %v689_v11  ;;  %v747_v55 = vmul.f32 %v2803_v10, %v743_v51  ;;  %v3033_v10 = vld [vmem:[%s3626_s4 + $0xa8] sm:$0xff]   ;;  %v2431_v50 = vld [vmem:[%s3631_s9 + $0x1] sm:$0x1] }
 0x4f4   :  { %v748_v56 = vmul.f32 %v2804_v12, %v743_v51 }
 0x4f5   :  { %v753_v57 = vrot.slane %v738_v52, %v3276_v19 }
 0x4f7   :  { %v756_v58 = vadd.f32 %v753_v57, %v746_v53  ;;  %v755_v59 = vadd.f32 %v753_v57, %v745_v54  ;;  %v757_v60 = vadd.f32 %v753_v57, %v747_v55  ;;  %v758_v61 = vadd.f32 %v753_v57, %v748_v56 }
 0x4f9   :  { %v759_v62 = vmax.f32 %v755_v59, 0.0  ;;  %v760_v63 = vmax.f32 %v756_v58, 0.0  ;;  %v761_v0 = vmax.f32 %v757_v60, 0.0  ;;  %v762_v1 = vmax.f32 %v758_v61, 0.0 }
 0x4fb   :  { %v763_v2 = vpack.c.bf16 %v760_v63, %v759_v62  ;;  %v764_v3 = vpack.c.bf16 %v762_v1, %v761_v0 }
 0x4fd   :  { %2821 = vmatprep.mubr.bf16.mxu1 %v763_v2 }
 0x4fe   :  { %2822 = vmatmul.mubr.bf16.vlgmr.msra.gmra.mrb[8].mxu1 %v764_v3 }
 0x4ff   :  { %2834 = vmatpush3.bf16.msra.mxu1 %v3028_v5  ;;  %v3027_v5 = vld [vmem:[%s3624_s2 + $0x8] sm:$0xff]  }
 0x500   :  { %2835 = vmatprep.subr.bf16.mxu1 %v3029_v6 }
 0x503   :  { %2836 = vmatpush3.bf16.msra.mxu1 %v3029_v6  ;;  %v3034_v6 = vld [vmem:[%s3626_s4 + $0xb0] sm:$0xff]  }
 0x504   :  { %2837 = vmatprep.subr.bf16.mxu1 %v3030_v7 }
 0x507   :  { %2838 = vmatpush3.bf16.msra.mxu1 %v3030_v7  ;;  %v3035_v7 = vld [vmem:[%s3626_s4 + $0xb8] sm:$0xff]  }
 0x508   :  { %2839 = vmatprep.subr.bf16.mxu1 %v3031_v8 }
 0x50b   :  { %2840 = vmatpush3.bf16.msra.mxu1 %v3031_v8  ;;  %v1022_v8 = vstv %s2436_s22 }
 0x50c   :  { %2841 = vmatprep.subr.bf16.mxu1 %v3032_v9 }
 0x50f   :  { %2842 = vmatpush3.bf16.msra.mxu1 %v3032_v9 }
 0x510   :  { %2843 = vmatprep.subr.bf16.mxu1 %v3033_v10 }
 0x513   :  { %2844 = vmatpush3.bf16.msra.mxu1 %v3033_v10 }
 0x514   :  { %2845 = vmatprep.subr.bf16.mxu1 %v3034_v6 }
 0x517   :  { %2846 = vmatpush3.bf16.msra.mxu1 %v3034_v6  ;;  %v2462_v6 = vld [vmem:[%s3628_s6 + $0x2] sm:$0x1] }
 0x518   :  { %2847 = vmatprep.subr.bf16.mxu1 %v3035_v7 }
 0x51b   :  { %2848 = vmatpush3.bf16.msra.mxu1 %v3035_v7 }
 0x5d1   :  { %v2823_v11 = vpop.f32.mrb[8].mxu1 }
 0x5d2   :  { %v864_v12 = vpop.f32.mrb[9].mxu1  ;;  %v895_v22 = vmul.f32 %v2823_v11, %v2823_v11 }
 0x5d3   :  { %v2824_v13 = vpop.f32.mrb[10].mxu1  ;;  %v893_v15 = vmul.f32 %v864_v12, %v864_v12 }
 0x5d4   :  { %v867_v14 = vpop.f32.mrb[11].mxu1  ;;  %v896_v25 = vmul.f32 %v2824_v13, %v2824_v13 }
 0x5d5   :  { %v883_v16 = vadd.f32 %v867_v14, %v864_v12  ;;  %v894_v20 = vmul.f32 %v867_v14, %v867_v14 }
 0x5d7   :  { %v884_v23 = vadd.f32 %v2823_v11, %v883_v16  ;;  %v897_v24 = vadd.f32 %v894_v20, %v893_v15 }
 0x5d9   :  { %v885_v27 = vadd.f32 %v2824_v13, %v884_v23  ;;  %v898_v28 = vadd.f32 %v897_v24, %v895_v22 }
 0x5db   :  { %v886_v29 = vrot.slane %v885_v27, 4  ;;  %v899_v30 = vadd.f32 %v898_v28, %v896_v25 }
 0x5dd   :  { %v887_v31 = vadd.f32 %v886_v29, %v885_v27  ;;  %v900_v32 = vrot.slane %v899_v30, 4 }
 0x5df   :  { %v888_v33 = vrot.slane %v887_v31, 2  ;;  %v901_v34 = vadd.f32 %v900_v32, %v899_v30  ;;  %v3040_v32 = vld [vmem:[%s3629_s7 + $0xa0] sm:$0xff]  }
 0x5e1   :  { %v889_v35 = vadd.f32 %v888_v33, %v887_v31  ;;  %v902_v36 = vrot.slane %v901_v34, 2  ;;  %v3041_v33 = vld [vmem:[%s3629_s7 + $0xa8] sm:$0xff]  }
 0x5e3   :  { %v890_v37 = vrot.slane %v889_v35, 1  ;;  %v903_v38 = vadd.f32 %v902_v36, %v901_v34  ;;  %v3042_v34 = vld [vmem:[%s3629_s7 + $0xb0] sm:$0xff]  }
 0x5e5   :  { %v891_v39 = vadd.f32 %v890_v37, %v889_v35  ;;  %v904_v40 = vrot.slane %v903_v38, 1  ;;  %v3043_v35 = vld [vmem:[%s3629_s7 + $0xb8] sm:$0xff]  }
 0x5e7   :  { %v892_v41 = vmul.f32 0.03125, %v891_v39  ;;  %v905_v42 = vadd.f32 %v904_v40, %v903_v38 }
 0x5e9   :  { %v906_v43 = vmul.f32 0.03125, %v905_v42  ;;  %v907_v44 = vmul.f32 %v892_v41, %v892_v41 }
 0x5eb   :  { %v908_v45 = vsub.f32 %v906_v43, %v907_v44 }
 0x5ed   :  { %v909_v46 = vadd.f32 1e-05, %v908_v45 }
 0x5ef   :  { %3086 = vrsqrt.f32 %v909_v46 }
 0x5f9   :  { %v3087_v48 = vpop.eup %3086 }
 0x5fa   :  { %v911_v49 = vmul.f32 %v3087_v48, %v2430_v47 }
 0x5fc   :  { %v912_v51 = vmul.f32 %v911_v49, %v892_v41  ;;  %v918_v52 = vrot.slane %v911_v49, %v3276_v19 }
 0x5fe   :  { %v913_v53 = vsub.f32 %v2431_v50, %v912_v51  ;;  %v921_v54 = vmul.f32 %v918_v52, %v867_v14  ;;  %v920_v55 = vmul.f32 %v918_v52, %v864_v12  ;;  %v922_v56 = vmul.f32 %v2823_v11, %v918_v52 }
 0x5ff   :  { %v923_v57 = vmul.f32 %v2824_v13, %v918_v52 }
 0x600   :  { %v928_v58 = vrot.slane %v913_v53, %v3276_v19 }
 0x602   :  { %v931_v59 = vadd.f32 %v928_v58, %v921_v54  ;;  %v930_v60 = vadd.f32 %v928_v58, %v920_v55  ;;  %v932_v61 = vadd.f32 %v928_v58, %v922_v56  ;;  %v933_v62 = vadd.f32 %v928_v58, %v923_v57 }
 0x604   :  { %v934_v63 = vmax.f32 %v930_v60, 0.0  ;;  %v935_v0 = vmax.f32 %v931_v59, 0.0  ;;  %v936_v1 = vmax.f32 %v932_v61, 0.0  ;;  %v937_v2 = vmax.f32 %v933_v62, 0.0 }
 0x606   :  { %v950_v3 = vpack.c.bf16 %v935_v0, %v934_v63  ;;  %v951_v4 = vpack.c.bf16 %v937_v2, %v936_v1  ;;  %v1025_v11 = vmul.f32 %v1022_v8, %v936_v1  ;;  %v1023_v14 = vmul.f32 %v1022_v8, %v934_v63 }
 0x607   :  { %v1026_v22 = vmul.f32 %v1022_v8, %v937_v2  ;;  %v1024_v27 = vmul.f32 %v1022_v8, %v935_v0 }
 0x608   :  { %2825 = vmatprep.subr.bf16.mxu0 %v950_v3 }
 0x609   :  { %2826 = vmatpush3.bf16.msra.mxu0 %v950_v3  ;;  %v2461_v3 = vld [vmem:[%s3627_s5 + $0x2] sm:$0x1] }
 0x60a   :  { %2827 = vmatprep.subr.bf16.mxu0 %v951_v4 }
 0x60d   :  { %2828 = vmatpush3.bf16.msra.mxu0 %v951_v4 }
 0x610   :  { %2830 = vmatmul.mubr.msk.bf16.vlgmr.msra.gmra.mrb[12].mxu0 %vm84_vm0, %v3027_v5 }
 0x6e3   :  { %v2831_v9 = vpop.f32.mrb[12].mxu0 }
 0x6e4   :  { %v1015_v10 = vadd.f32 %v2831_v9, %v3228_v17  ;;  %v1006_v12 = vpop.f32.mrb[13].mxu0  ;;  %v3036_v17 = vld [vmem:[%s3629_s7 + $0x80] sm:$0xff]  }
 0x6e5   :  { %v1007_v13 = vadd.f32 %v1006_v12, %v3233_v18  ;;  %v2832_v15 = vpop.f32.mrb[14].mxu0  ;;  %2853 = vmatprep.subr.bf16.mxu0 %v3036_v17  ;;  %v3037_v18 = vld [vmem:[%s3629_s7 + $0x88] sm:$0xff]  }
 0x6e6   :  { %v1029_v16 = vadd.f32 %v1025_v11, %v1015_v10  ;;  %v1018_v20 = vadd.f32 %v2832_v15, %v3238_v21  ;;  %v1009_v23 = vpop.f32.mrb[15].mxu0  ;;  %2854 = vmatpush3.bf16.msra.mxu0 %v3036_v17  ;;  %v3038_v21 = vld [vmem:[%s3629_s7 + $0x90] sm:$0xff]   ;;  %v3047_v17 = vld [vmem:[%s3626_s4 + $0xc8] sm:$0xff]  }
 0x6e7   :  { %v1027_v24 = vadd.f32 %v1023_v14, %v1007_v13  ;;  %v1010_v25 = vadd.f32 %v1009_v23, %v3244_v26  ;;  %2855 = vmatprep.subr.bf16.mxu0 %v3037_v18  ;;  %v3039_v26 = vld [vmem:[%s3629_s7 + $0x98] sm:$0xff]  }
 0x6e8   :  { %v1030_v28 = vadd.f32 %v1026_v22, %v1018_v20 }
 0x6e9   :  { %v1028_v29 = vadd.f32 %v1024_v27, %v1010_v25 }
 0x6ea   :  { %v1032_v30 = vpack.c.bf16 %v1030_v28, %v1029_v16  ;;  %2856 = vmatpush3.bf16.msra.mxu0 %v3037_v18  ;;  %v3048_v18 = vld [vmem:[%s3626_s4 + $0xd0] sm:$0xff]  }
 0x6eb   :  { %v1031_v31 = vpack.c.bf16 %v1028_v29, %v1027_v24  ;;  %2857 = vmatprep.subr.bf16.mxu0 %v3038_v21 }
 0x6ed   :  { %2849 = vmatprep.mubr.bf16.mxu1 %v1031_v31  ;;  %v3046_v31 = vld [vmem:[%s3626_s4 + $0xc0] sm:$0xff]  }
 0x6ee   :  { %2850 = vmatmul.mubr.bf16.vlgmr.msra.gmra.mrb[12].mxu1 %v1032_v30  ;;  %2858 = vmatpush3.bf16.msra.mxu0 %v3038_v21  ;;  %v3044_v30 = vld [vmem:[%s3624_s2] sm:$0xff]   ;;  %v3049_v21 = vld [vmem:[%s3626_s4 + $0xd8] sm:$0xff]  }
 0x6ef   :  { %2859 = vmatprep.subr.bf16.mxu0 %v3039_v26  ;;  %2877 = vmatprep.mubr.msk.bf16.mxu1 %vm84_vm0, %v3044_v30  ;;  %v3478_v30 = vld [vmem:[%s3625_s3 + $0x10] sm:$0xff] }
 0x6f2   :  { %2860 = vmatpush3.bf16.msra.mxu0 %v3039_v26  ;;  %v3050_v26 = vld [vmem:[%s3626_s4 + $0xe0] sm:$0xff]  }
 0x6f3   :  { %2861 = vmatprep.subr.bf16.mxu0 %v3040_v32 }
 0x6f6   :  { %2862 = vmatpush3.bf16.msra.mxu0 %v3040_v32  ;;  %v3051_v32 = vld [vmem:[%s3626_s4 + $0xe8] sm:$0xff]  }
 0x6f7   :  { %2863 = vmatprep.subr.bf16.mxu0 %v3041_v33 }
 0x6fa   :  { %2864 = vmatpush3.bf16.msra.mxu0 %v3041_v33 }
 0x6fb   :  { %2865 = vmatprep.subr.bf16.mxu0 %v3042_v34 }
 0x6fe   :  { %2866 = vmatpush3.bf16.msra.mxu0 %v3042_v34 }
 0x6ff   :  { %2867 = vmatprep.subr.bf16.mxu0 %v3043_v35 }
 0x702   :  { %2868 = vmatpush3.bf16.msra.mxu0 %v3043_v35 }
 0x703   :  { %2881 = vmatprep.subr.bf16.mxu0 %v3046_v31 }
 0x7c1   :  { %v2851_v36 = vpop.f32.mrb[12].mxu1 }
 0x7c2   :  { %v1132_v37 = vpop.f32.mrb[13].mxu1  ;;  %v1163_v43 = vmul.f32 %v2851_v36, %v2851_v36 }
 0x7c3   :  { %v2852_v38 = vpop.f32.mrb[14].mxu1  ;;  %v1161_v40 = vmul.f32 %v1132_v37, %v1132_v37 }
 0x7c4   :  { %v1135_v39 = vpop.f32.mrb[15].mxu1  ;;  %v1164_v46 = vmul.f32 %v2852_v38, %v2852_v38 }
 0x7c5   :  { %v1151_v41 = vadd.f32 %v1135_v39, %v1132_v37  ;;  %v1162_v42 = vmul.f32 %v1135_v39, %v1135_v39 }
 0x7c7   :  { %v1152_v44 = vadd.f32 %v2851_v36, %v1151_v41  ;;  %v1165_v45 = vadd.f32 %v1162_v42, %v1161_v40 }
 0x7c9   :  { %v1153_v47 = vadd.f32 %v2852_v38, %v1152_v44  ;;  %v1166_v48 = vadd.f32 %v1165_v45, %v1163_v43 }
 0x7cb   :  { %v1154_v49 = vrot.slane %v1153_v47, 4  ;;  %v1167_v50 = vadd.f32 %v1166_v48, %v1164_v46 }
 0x7cd   :  { %v1155_v51 = vadd.f32 %v1154_v49, %v1153_v47  ;;  %v1168_v52 = vrot.slane %v1167_v50, 4 }
 0x7cf   :  { %v1156_v53 = vrot.slane %v1155_v51, 2  ;;  %v1169_v54 = vadd.f32 %v1168_v52, %v1167_v50 }
 0x7d1   :  { %v1157_v55 = vadd.f32 %v1156_v53, %v1155_v51  ;;  %v1170_v56 = vrot.slane %v1169_v54, 2 }
 0x7d3   :  { %v1158_v57 = vrot.slane %v1157_v55, 1  ;;  %v1171_v58 = vadd.f32 %v1170_v56, %v1169_v54 }
 0x7d5   :  { %v1159_v59 = vadd.f32 %v1158_v57, %v1157_v55  ;;  %v1172_v60 = vrot.slane %v1171_v58, 1 }
 0x7d7   :  { %v1160_v61 = vmul.f32 0.03125, %v1159_v59  ;;  %v1173_v62 = vadd.f32 %v1172_v60, %v1171_v58 }
 0x7d9   :  { %v1174_v63 = vmul.f32 0.03125, %v1173_v62  ;;  %v1175_v0 = vmul.f32 %v1160_v61, %v1160_v61 }
 0x7db   :  { %v1176_v1 = vsub.f32 %v1174_v63, %v1175_v0  ;;  %v2487_v0 = vld [vmem:[%s3630_s8 + $0x2] sm:$0x1] }
 0x7dd   :  { %v1177_v2 = vadd.f32 1e-05, %v1176_v1 }
 0x7df   :  { %3088 = vrsqrt.f32 %v1177_v2 }
 0x7e9   :  { %v3089_v4 = vpop.eup %3088 }
 0x7ea   :  { %v1179_v5 = vmul.f32 %v3089_v4, %v2461_v3  ;;  %v2488_v3 = vld [vmem:[%s3631_s9 + $0x2] sm:$0x1] }
 0x7ec   :  { %v1180_v7 = vmul.f32 %v1179_v5, %v1160_v61  ;;  %v1186_v8 = vrot.slane %v1179_v5, %v3276_v19 }
 0x7ee   :  { %v1181_v9 = vsub.f32 %v2462_v6, %v1180_v7  ;;  %v1189_v10 = vmul.f32 %v1186_v8, %v1135_v39  ;;  %v1188_v11 = vmul.f32 %v1186_v8, %v1132_v37  ;;  %v1190_v12 = vmul.f32 %v2851_v36, %v1186_v8 }
 0x7ef   :  { %v1191_v13 = vmul.f32 %v2852_v38, %v1186_v8 }
 0x7f0   :  { %v1196_v14 = vrot.slane %v1181_v9, %v3276_v19 }
 0x7f2   :  { %v1199_v15 = vadd.f32 %v1196_v14, %v1189_v10  ;;  %v1198_v16 = vadd.f32 %v1196_v14, %v1188_v11  ;;  %v1200_v20 = vadd.f32 %v1196_v14, %v1190_v12  ;;  %v1201_v22 = vadd.f32 %v1196_v14, %v1191_v13 }
 0x7f4   :  { %v1202_v23 = vmax.f32 %v1198_v16, 0.0  ;;  %v1203_v24 = vmax.f32 %v1199_v15, 0.0  ;;  %v1204_v25 = vmax.f32 %v1200_v20, 0.0  ;;  %v1205_v27 = vmax.f32 %v1201_v22, 0.0 }
 0x7f6   :  { %v1206_v28 = vpack.c.bf16 %v1203_v24, %v1202_v23  ;;  %v1207_v29 = vpack.c.bf16 %v1205_v27, %v1204_v25  ;;  %v3045_v27 = vld [vmem:[%s3624_s2 + $0x8] sm:$0xff]  }
 0x7f8   :  { %2869 = vmatprep.mubr.bf16.mxu0 %v1206_v28  ;;  %v3052_v28 = vld [vmem:[%s3626_s4 + $0xf0] sm:$0xff]  }
 0x7f9   :  { %2870 = vmatmul.mubr.bf16.vlgmr.msra.gmra.mrb[16].mxu0 %v1207_v29  ;;  %v3053_v29 = vld [vmem:[%s3626_s4 + $0xf8] sm:$0xff]  }
 0x7fa   :  { %2882 = vmatpush3.bf16.msra.mxu0 %v3046_v31  ;;  %v1465_v31 = vstv %s2493_s25 }
 0x7fb   :  { %2883 = vmatprep.subr.bf16.mxu0 %v3047_v17 }
 0x7fe   :  { %2884 = vmatpush3.bf16.msra.mxu0 %v3047_v17  ;;  %v3483_v17 = vld [vmem:[%s3625_s3] sm:$0xff] }
 0x7ff   :  { %2885 = vmatprep.subr.bf16.mxu0 %v3048_v18 }
 0x802   :  { %2886 = vmatpush3.bf16.msra.mxu0 %v3048_v18 }
 0x803   :  { %2887 = vmatprep.subr.bf16.mxu0 %v3049_v21 }
 0x806   :  { %2888 = vmatpush3.bf16.msra.mxu0 %v3049_v21  ;;  %v3488_v21 = vld [vmem:[%s3625_s3 + $0x18] sm:$0xff] }
 0x807   :  { %2889 = vmatprep.subr.bf16.mxu0 %v3050_v26 }
 0x80a   :  { %2890 = vmatpush3.bf16.msra.mxu0 %v3050_v26 }
 0x80b   :  { %2891 = vmatprep.subr.bf16.mxu0 %v3051_v32 }
 0x80e   :  { %2892 = vmatpush3.bf16.msra.mxu0 %v3051_v32 }
 0x80f   :  { %2893 = vmatprep.subr.bf16.mxu0 %v3052_v28 }
 0x812   :  { %2894 = vmatpush3.bf16.msra.mxu0 %v3052_v28 }
 0x813   :  { %2895 = vmatprep.subr.bf16.mxu0 %v3053_v29 }
 0x816   :  { %2896 = vmatpush3.bf16.msra.mxu0 %v3053_v29  ;;  %v2518_v29 = vld [vmem:[%s3627_s5 + $0x3] sm:$0x1] }
 0x8cc   :  { %v2871_v33 = vpop.f32.mrb[16].mxu0 }
 0x8cd   :  { %v1307_v34 = vpop.f32.mrb[17].mxu0  ;;  %v1338_v40 = vmul.f32 %v2871_v33, %v2871_v33 }
 0x8ce   :  { %v2872_v35 = vpop.f32.mrb[18].mxu0  ;;  %v1336_v37 = vmul.f32 %v1307_v34, %v1307_v34 }
 0x8cf   :  { %v1310_v36 = vpop.f32.mrb[19].mxu0  ;;  %v1339_v43 = vmul.f32 %v2872_v35, %v2872_v35 }
 0x8d0   :  { %v1326_v38 = vadd.f32 %v1310_v36, %v1307_v34  ;;  %v1337_v39 = vmul.f32 %v1310_v36, %v1310_v36 }
 0x8d2   :  { %v1327_v41 = vadd.f32 %v2871_v33, %v1326_v38  ;;  %v1340_v42 = vadd.f32 %v1337_v39, %v1336_v37 }
 0x8d4   :  { %v1328_v44 = vadd.f32 %v2872_v35, %v1327_v41  ;;  %v1341_v45 = vadd.f32 %v1340_v42, %v1338_v40 }
 0x8d6   :  { %v1329_v46 = vrot.slane %v1328_v44, 4  ;;  %v1342_v47 = vadd.f32 %v1341_v45, %v1339_v43 }
 0x8d8   :  { %v1330_v48 = vadd.f32 %v1329_v46, %v1328_v44  ;;  %v1343_v49 = vrot.slane %v1342_v47, 4 }
 0x8da   :  { %v1331_v50 = vrot.slane %v1330_v48, 2  ;;  %v1344_v51 = vadd.f32 %v1343_v49, %v1342_v47  ;;  %v3054_v49 = vld [vmem:[%s3629_s7 + $0xc0] sm:$0xff]  }
 0x8dc   :  { %v1332_v52 = vadd.f32 %v1331_v50, %v1330_v48  ;;  %v1345_v53 = vrot.slane %v1344_v51, 2  ;;  %v3055_v50 = vld [vmem:[%s3629_s7 + $0xc8] sm:$0xff]  }
 0x8de   :  { %v1333_v54 = vrot.slane %v1332_v52, 1  ;;  %v1346_v55 = vadd.f32 %v1345_v53, %v1344_v51  ;;  %v3056_v51 = vld [vmem:[%s3629_s7 + $0xd0] sm:$0xff]   ;;  %v3058_v53 = vld [vmem:[%s3629_s7 + $0xe0] sm:$0xff]  }
 0x8e0   :  { %v1334_v56 = vadd.f32 %v1333_v54, %v1332_v52  ;;  %v1347_v57 = vrot.slane %v1346_v55, 1  ;;  %v3057_v52 = vld [vmem:[%s3629_s7 + $0xd8] sm:$0xff]   ;;  %v3059_v54 = vld [vmem:[%s3629_s7 + $0xe8] sm:$0xff]  }
 0x8e2   :  { %v1335_v58 = vmul.f32 0.03125, %v1334_v56  ;;  %v1348_v59 = vadd.f32 %v1347_v57, %v1346_v55  ;;  %v3060_v55 = vld [vmem:[%s3629_s7 + $0xf0] sm:$0xff]   ;;  %v3061_v56 = vld [vmem:[%s3629_s7 + $0xf8] sm:$0xff]  }
 0x8e4   :  { %v1349_v60 = vmul.f32 0.03125, %v1348_v59  ;;  %v1350_v61 = vmul.f32 %v1335_v58, %v1335_v58 }
 0x8e6   :  { %v1351_v62 = vsub.f32 %v1349_v60, %v1350_v61 }
 0x8e8   :  { %v1352_v63 = vadd.f32 1e-05, %v1351_v62 }
 0x8ea   :  { %3090 = vrsqrt.f32 %v1352_v63 }
 0x8f4   :  { %v3091_v1 = vpop.eup %3090 }
 0x8f5   :  { %v1354_v2 = vmul.f32 %v3091_v1, %v2487_v0 }
 0x8f7   :  { %v1355_v4 = vmul.f32 %v1354_v2, %v1335_v58  ;;  %v1361_v5 = vrot.slane %v1354_v2, %v3276_v19 }
 0x8f9   :  { %v1356_v6 = vsub.f32 %v2488_v3, %v1355_v4  ;;  %v1364_v7 = vmul.f32 %v1361_v5, %v1310_v36  ;;  %v1363_v8 = vmul.f32 %v1361_v5, %v1307_v34  ;;  %v1365_v9 = vmul.f32 %v2871_v33, %v1361_v5  ;;  %v3494_v34 = vld [vmem:[%s3625_s3 + $0x8] sm:$0xff]  ;;  %s2550_s3 = sld [smem:[#allocation3 + $0x4]] }
 0x8fa   :  { %v1366_v10 = vmul.f32 %v2872_v35, %v1361_v5 }
 0x8fb   :  { %v1371_v11 = vrot.slane %v1356_v6, %v3276_v19 }
 0x8fd   :  { %v1374_v12 = vadd.f32 %v1371_v11, %v1364_v7  ;;  %v1373_v13 = vadd.f32 %v1371_v11, %v1363_v8  ;;  %v1375_v14 = vadd.f32 %v1371_v11, %v1365_v9  ;;  %v1376_v15 = vadd.f32 %v1371_v11, %v1366_v10 }
 0x8ff   :  { %v1377_v16 = vmax.f32 %v1373_v13, 0.0  ;;  %v1378_v20 = vmax.f32 %v1374_v12, 0.0  ;;  %v1379_v22 = vmax.f32 %v1375_v14, 0.0  ;;  %v1380_v23 = vmax.f32 %v1376_v15, 0.0 }
 0x901   :  { %v1393_v24 = vpack.c.bf16 %v1378_v20, %v1377_v16  ;;  %v1394_v25 = vpack.c.bf16 %v1380_v23, %v1379_v22  ;;  %v1468_v32 = vmul.f32 %v1465_v31, %v1379_v22  ;;  %v1466_v36 = vmul.f32 %v1465_v31, %v1377_v16 }
 0x902   :  { %v1469_v40 = vmul.f32 %v1465_v31, %v1380_v23  ;;  %v1467_v44 = vmul.f32 %v1465_v31, %v1378_v20 }
 0x903   :  { %2873 = vmatprep.subr.bf16.mxu1 %v1393_v24 }
 0x904   :  { %2874 = vmatpush3.bf16.msra.mxu1 %v1393_v24 }
 0x905   :  { %2875 = vmatprep.subr.bf16.mxu1 %v1394_v25 }
 0x908   :  { %2876 = vmatpush3.bf16.msra.mxu1 %v1394_v25 }
 0x909   :  { %2901 = vmatprep.subr.bf16.mxu1 %v3054_v49 }
 0x90b   :  { %2878 = vmatmul.mubr.msk.bf16.vlgmr.msra.gmra.mrb[16].mxu1 %vm84_vm0, %v3045_v27 }
 0x90c   :  { %2902 = vmatpush3.bf16.msra.mxu1 %v3054_v49 }
 0x90d   :  { %2903 = vmatprep.subr.bf16.mxu1 %v3055_v50 }
 0x910   :  { %2904 = vmatpush3.bf16.msra.mxu1 %v3055_v50 }
 0x911   :  { %2905 = vmatprep.subr.bf16.mxu1 %v3056_v51 }
 0x914   :  { %2906 = vmatpush3.bf16.msra.mxu1 %v3056_v51  ;;  %v3062_v51 = vld [vmem:[%s3624_s2] sm:$0xff]  }
 0x915   :  { %2907 = vmatprep.subr.bf16.mxu1 %v3057_v52 }
 0x918   :  { %2908 = vmatpush3.bf16.msra.mxu1 %v3057_v52  ;;  %v3064_v52 = vld [vmem:[%s3626_s4 + $0x100] sm:$0xff]  }
 0x919   :  { %2909 = vmatprep.subr.bf16.mxu1 %v3058_v53 }
 0x91c   :  { %2910 = vmatpush3.bf16.msra.mxu1 %v3058_v53  ;;  %v3065_v53 = vld [vmem:[%s3626_s4 + $0x108] sm:$0xff]  }
 0x91d   :  { %2911 = vmatprep.subr.bf16.mxu1 %v3059_v54 }
 0x920   :  { %2912 = vmatpush3.bf16.msra.mxu1 %v3059_v54  ;;  %v3066_v54 = vld [vmem:[%s3626_s4 + $0x110] sm:$0xff]  }
 0x921   :  { %2913 = vmatprep.subr.bf16.mxu1 %v3060_v55 }
 0x924   :  { %2914 = vmatpush3.bf16.msra.mxu1 %v3060_v55  ;;  %v3067_v55 = vld [vmem:[%s3626_s4 + $0x118] sm:$0xff]  }
 0x925   :  { %2915 = vmatprep.subr.bf16.mxu1 %v3061_v56 }
 0x928   :  { %2916 = vmatpush3.bf16.msra.mxu1 %v3061_v56  ;;  %v3068_v56 = vld [vmem:[%s3626_s4 + $0x120] sm:$0xff]  }
 0x929   :  { %2929 = vmatprep.subr.bf16.mxu1 %v3064_v52 }
 0x9de   :  { %v2879_v18 = vpop.f32.mrb[16].mxu1 }
 0x9df   :  { %v1458_v26 = vadd.f32 %v2879_v18, %v3478_v30  ;;  %v1449_v33 = vpop.f32.mrb[17].mxu1 }
 0x9e0   :  { %v1450_v35 = vadd.f32 %v1449_v33, %v3483_v17  ;;  %v2880_v37 = vpop.f32.mrb[18].mxu1 }
 0x9e1   :  { %v1472_v38 = vadd.f32 %v1468_v32, %v1458_v26  ;;  %v1461_v39 = vadd.f32 %v2880_v37, %v3488_v21  ;;  %v1452_v41 = vpop.f32.mrb[19].mxu1  ;;  %v2519_v26 = vld [vmem:[%s3628_s6 + $0x3] sm:$0x1] }
 0x9e2   :  { %v1470_v42 = vadd.f32 %v1466_v36, %v1450_v35  ;;  %v1453_v43 = vadd.f32 %v1452_v41, %v3494_v34 }
 0x9e3   :  { %v1473_v45 = vadd.f32 %v1469_v40, %v1461_v39 }
 0x9e4   :  { %v1471_v46 = vadd.f32 %v1467_v44, %v1453_v43 }
 0x9e5   :  { %v1475_v47 = vpack.c.bf16 %v1473_v45, %v1472_v38 }
 0x9e6   :  { %v1474_v48 = vpack.c.bf16 %v1471_v46, %v1470_v42 }
 0x9e8   :  { %2897 = vmatprep.mubr.bf16.mxu0 %v1474_v48 }
 0x9e9   :  { %2898 = vmatmul.mubr.bf16.vlgmr.msra.gmra.mrb[20].mxu0 %v1475_v47 }
 0x9ea   :  { %2925 = vmatprep.mubr.msk.bf16.mxu0 %vm84_vm0, %v3062_v51 }
 0xabc   :  { %v2899_v57 = vpop.f32.mrb[20].mxu0 }
 0xabd   :  { %v1575_v58 = vpop.f32.mrb[21].mxu0  ;;  %v1606_v0 = vmul.f32 %v2899_v57, %v2899_v57 }
 0xabe   :  { %v2900_v59 = vpop.f32.mrb[22].mxu0  ;;  %v1604_v61 = vmul.f32 %v1575_v58, %v1575_v58 }
 0xabf   :  { %v1578_v60 = vpop.f32.mrb[23].mxu0  ;;  %v1607_v3 = vmul.f32 %v2900_v59, %v2900_v59 }
 0xac0   :  { %v1594_v62 = vadd.f32 %v1578_v60, %v1575_v58  ;;  %v1605_v63 = vmul.f32 %v1578_v60, %v1578_v60 }
 0xac2   :  { %v1595_v1 = vadd.f32 %v2899_v57, %v1594_v62  ;;  %v1608_v2 = vadd.f32 %v1605_v63, %v1604_v61 }
 0xac4   :  { %v1596_v4 = vadd.f32 %v2900_v59, %v1595_v1  ;;  %v1609_v5 = vadd.f32 %v1608_v2, %v1606_v0 }
 0xac6   :  { %v1597_v6 = vrot.slane %v1596_v4, 4  ;;  %v1610_v7 = vadd.f32 %v1609_v5, %v1607_v3 }
 0xac8   :  { %v1598_v8 = vadd.f32 %v1597_v6, %v1596_v4  ;;  %v1611_v9 = vrot.slane %v1610_v7, 4 }
 0xaca   :  { %v1599_v10 = vrot.slane %v1598_v8, 2  ;;  %v1612_v11 = vadd.f32 %v1611_v9, %v1610_v7 }
 0xacc   :  { %v1600_v12 = vadd.f32 %v1599_v10, %v1598_v8  ;;  %v1613_v13 = vrot.slane %v1612_v11, 2 }
 0xace   :  { %v1601_v14 = vrot.slane %v1600_v12, 1  ;;  %v1614_v15 = vadd.f32 %v1613_v13, %v1612_v11 }
 0xad0   :  { %v1602_v16 = vadd.f32 %v1601_v14, %v1600_v12  ;;  %v1615_v20 = vrot.slane %v1614_v15, 1 }
 0xad2   :  { %v1603_v22 = vmul.f32 0.03125, %v1602_v16  ;;  %v1616_v23 = vadd.f32 %v1615_v20, %v1614_v15 }
 0xad4   :  { %v1617_v24 = vmul.f32 0.03125, %v1616_v23  ;;  %v1618_v25 = vmul.f32 %v1603_v22, %v1603_v22 }
 0xad6   :  { %v1619_v27 = vsub.f32 %v1617_v24, %v1618_v25 }
 0xad8   :  { %v1620_v28 = vadd.f32 1e-05, %v1619_v27 }
 0xada   :  { %3092 = vrsqrt.f32 %v1620_v28 }
 0xae4   :  { %v3093_v31 = vpop.eup %3092 }
 0xae5   :  { %v1622_v18 = vmul.f32 %v3093_v31, %v2518_v29  ;;  %v2544_v31 = vld [vmem:[%s3630_s8 + $0x3] sm:$0x1] }
 0xae7   :  { %v1623_v32 = vmul.f32 %v1622_v18, %v1603_v22  ;;  %v1629_v33 = vrot.slane %v1622_v18, %v3276_v19 }
 0xae9   :  { %v1624_v35 = vsub.f32 %v2519_v26, %v1623_v32  ;;  %v1632_v36 = vmul.f32 %v1629_v33, %v1578_v60  ;;  %v1631_v37 = vmul.f32 %v1629_v33, %v1575_v58  ;;  %v1633_v38 = vmul.f32 %v2899_v57, %v1629_v33  ;;  %v3069_v57 = vld [vmem:[%s3626_s4 + $0x128] sm:$0xff]   ;;  %v2545_v32 = vld [vmem:[%s3631_s9 + $0x3] sm:$0x1] }
 0xaea   :  { %v1634_v39 = vmul.f32 %v2900_v59, %v1629_v33 }
 0xaeb   :  { %v1639_v40 = vrot.slane %v1624_v35, %v3276_v19 }
 0xaed   :  { %v1642_v41 = vadd.f32 %v1639_v40, %v1632_v36  ;;  %v1641_v42 = vadd.f32 %v1639_v40, %v1631_v37  ;;  %v1643_v43 = vadd.f32 %v1639_v40, %v1633_v38  ;;  %v1644_v44 = vadd.f32 %v1639_v40, %v1634_v39 }
 0xaef   :  { %v1645_v45 = vmax.f32 %v1641_v42, 0.0  ;;  %v1646_v46 = vmax.f32 %v1642_v41, 0.0  ;;  %v1647_v47 = vmax.f32 %v1643_v43, 0.0  ;;  %v1648_v48 = vmax.f32 %v1644_v44, 0.0 }
 0xaf1   :  { %v1649_v49 = vpack.c.bf16 %v1646_v46, %v1645_v45  ;;  %v1650_v50 = vpack.c.bf16 %v1648_v48, %v1647_v47 }
 0xaf3   :  { %2917 = vmatprep.mubr.bf16.mxu1 %v1649_v49 }
 0xaf4   :  { %2918 = vmatmul.mubr.bf16.vlgmr.msra.gmra.mrb[20].mxu1 %v1650_v50 }
 0xaf5   :  { %2930 = vmatpush3.bf16.msra.mxu1 %v3064_v52  ;;  %v3063_v52 = vld [vmem:[%s3624_s2 + $0x8] sm:$0xff]  }
 0xaf6   :  { %2931 = vmatprep.subr.bf16.mxu1 %v3065_v53 }
 0xaf9   :  { %2932 = vmatpush3.bf16.msra.mxu1 %v3065_v53  ;;  %v3070_v53 = vld [vmem:[%s3626_s4 + $0x130] sm:$0xff]  }
 0xafa   :  { %2933 = vmatprep.subr.bf16.mxu1 %v3066_v54 }
 0xafd   :  { %2934 = vmatpush3.bf16.msra.mxu1 %v3066_v54  ;;  %v3071_v54 = vld [vmem:[%s3626_s4 + $0x138] sm:$0xff]  }
 0xafe   :  { %2935 = vmatprep.subr.bf16.mxu1 %v3067_v55 }
 0xb01   :  { %2936 = vmatpush3.bf16.msra.mxu1 %v3067_v55  ;;  %v1908_v55 = vstv %s2550_s3 }
 0xb02   :  { %2937 = vmatprep.subr.bf16.mxu1 %v3068_v56 }
 0xb05   :  { %2938 = vmatpush3.bf16.msra.mxu1 %v3068_v56 }
 0xb06   :  { %2939 = vmatprep.subr.bf16.mxu1 %v3069_v57 }
 0xb09   :  { %2940 = vmatpush3.bf16.msra.mxu1 %v3069_v57 }
 0xb0a   :  { %2941 = vmatprep.subr.bf16.mxu1 %v3070_v53 }
 0xb0d   :  { %2942 = vmatpush3.bf16.msra.mxu1 %v3070_v53  ;;  %v2576_v53 = vld [vmem:[%s3628_s6 + $0x4] sm:$0x1] }
 0xb0e   :  { %2943 = vmatprep.subr.bf16.mxu1 %v3071_v54 }
 0xb11   :  { %2944 = vmatpush3.bf16.msra.mxu1 %v3071_v54 }
 0xbc7   :  { %v2919_v58 = vpop.f32.mrb[20].mxu1 }
 0xbc8   :  { %v1750_v59 = vpop.f32.mrb[21].mxu1  ;;  %v1781_v1 = vmul.f32 %v2919_v58, %v2919_v58 }
 0xbc9   :  { %v2920_v60 = vpop.f32.mrb[22].mxu1  ;;  %v1779_v62 = vmul.f32 %v1750_v59, %v1750_v59 }
 0xbca   :  { %v1753_v61 = vpop.f32.mrb[23].mxu1  ;;  %v1782_v4 = vmul.f32 %v2920_v60, %v2920_v60 }
 0xbcb   :  { %v1769_v63 = vadd.f32 %v1753_v61, %v1750_v59  ;;  %v1780_v0 = vmul.f32 %v1753_v61, %v1753_v61 }
 0xbcd   :  { %v1770_v2 = vadd.f32 %v2919_v58, %v1769_v63  ;;  %v1783_v3 = vadd.f32 %v1780_v0, %v1779_v62 }
 0xbcf   :  { %v1771_v5 = vadd.f32 %v2920_v60, %v1770_v2  ;;  %v1784_v6 = vadd.f32 %v1783_v3, %v1781_v1 }
 0xbd1   :  { %v1772_v7 = vrot.slane %v1771_v5, 4  ;;  %v1785_v8 = vadd.f32 %v1784_v6, %v1782_v4 }
 0xbd3   :  { %v1773_v9 = vadd.f32 %v1772_v7, %v1771_v5  ;;  %v1786_v10 = vrot.slane %v1785_v8, 4 }
 0xbd5   :  { %v1774_v11 = vrot.slane %v1773_v9, 2  ;;  %v1787_v12 = vadd.f32 %v1786_v10, %v1785_v8  ;;  %v3076_v10 = vld [vmem:[%s3629_s7 + $0x120] sm:$0xff]  }
 0xbd7   :  { %v1775_v13 = vadd.f32 %v1774_v11, %v1773_v9  ;;  %v1788_v14 = vrot.slane %v1787_v12, 2  ;;  %v3077_v11 = vld [vmem:[%s3629_s7 + $0x128] sm:$0xff]  }
 0xbd9   :  { %v1776_v15 = vrot.slane %v1775_v13, 1  ;;  %v1789_v16 = vadd.f32 %v1788_v14, %v1787_v12  ;;  %v3078_v12 = vld [vmem:[%s3629_s7 + $0x130] sm:$0xff]  }
 0xbdb   :  { %v1777_v20 = vadd.f32 %v1776_v15, %v1775_v13  ;;  %v1790_v22 = vrot.slane %v1789_v16, 1  ;;  %v3079_v13 = vld [vmem:[%s3629_s7 + $0x138] sm:$0xff]  }
 0xbdd   :  { %v1778_v23 = vmul.f32 0.03125, %v1777_v20  ;;  %v1791_v24 = vadd.f32 %v1790_v22, %v1789_v16 }
 0xbdf   :  { %v1792_v25 = vmul.f32 0.03125, %v1791_v24  ;;  %v1793_v27 = vmul.f32 %v1778_v23, %v1778_v23 }
 0xbe1   :  { %v1794_v28 = vsub.f32 %v1792_v25, %v1793_v27 }
 0xbe3   :  { %v1795_v29 = vadd.f32 1e-05, %v1794_v28 }
 0xbe5   :  { %3094 = vrsqrt.f32 %v1795_v29 }
 0xbef   :  { %v3095_v18 = vpop.eup %3094 }
 0xbf0   :  { %v1797_v26 = vmul.f32 %v3095_v18, %v2544_v31 }
 0xbf2   :  { %v1798_v33 = vmul.f32 %v1797_v26, %v1778_v23  ;;  %v1804_v35 = vrot.slane %v1797_v26, %v3276_v19 }
 0xbf4   :  { %v1799_v36 = vsub.f32 %v2545_v32, %v1798_v33  ;;  %v1807_v37 = vmul.f32 %v1804_v35, %v1753_v61  ;;  %v1806_v38 = vmul.f32 %v1804_v35, %v1750_v59  ;;  %v1808_v39 = vmul.f32 %v2919_v58, %v1804_v35 }
 0xbf5   :  { %v1809_v40 = vmul.f32 %v2920_v60, %v1804_v35 }
 0xbf6   :  { %v1814_v41 = vrot.slane %v1799_v36, %v3276_v19 }
 0xbf8   :  { %v1817_v42 = vadd.f32 %v1814_v41, %v1807_v37  ;;  %v1816_v43 = vadd.f32 %v1814_v41, %v1806_v38  ;;  %v1818_v44 = vadd.f32 %v1814_v41, %v1808_v39  ;;  %v1819_v45 = vadd.f32 %v1814_v41, %v1809_v40 }
 0xbfa   :  { %v1820_v46 = vmax.f32 %v1816_v43, 0.0  ;;  %v1821_v47 = vmax.f32 %v1817_v42, 0.0  ;;  %v1822_v48 = vmax.f32 %v1818_v44, 0.0  ;;  %v1823_v49 = vmax.f32 %v1819_v45, 0.0 }
 0xbfc   :  { %v1836_v50 = vpack.c.bf16 %v1821_v47, %v1820_v46  ;;  %v1837_v51 = vpack.c.bf16 %v1823_v49, %v1822_v48  ;;  %v1911_v58 = vmul.f32 %v1908_v55, %v1822_v48  ;;  %v1909_v61 = vmul.f32 %v1908_v55, %v1820_v46 }
 0xbfd   :  { %v1912_v1 = vmul.f32 %v1908_v55, %v1823_v49  ;;  %v1910_v5 = vmul.f32 %v1908_v55, %v1821_v47 }
 0xbfe   :  { %2921 = vmatprep.subr.bf16.mxu0 %v1836_v50 }
 0xbff   :  { %2922 = vmatpush3.bf16.msra.mxu0 %v1836_v50  ;;  %v2575_v50 = vld [vmem:[%s3627_s5 + $0x4] sm:$0x1] }
 0xc00   :  { %2923 = vmatprep.subr.bf16.mxu0 %v1837_v51 }
 0xc03   :  { %2924 = vmatpush3.bf16.msra.mxu0 %v1837_v51 }
 0xc06   :  { %2926 = vmatmul.mubr.msk.bf16.vlgmr.msra.gmra.mrb[24].mxu0 %vm84_vm0, %v3063_v52 }
 0xcd9   :  { %v2927_v56 = vpop.f32.mrb[24].mxu0 }
 0xcda   :  { %v1901_v57 = vadd.f32 %v2927_v56, %v3478_v30  ;;  %v1892_v59 = vpop.f32.mrb[25].mxu0  ;;  %v3072_v30 = vld [vmem:[%s3629_s7 + $0x100] sm:$0xff]  }
 0xcdb   :  { %v1893_v60 = vadd.f32 %v1892_v59, %v3483_v17  ;;  %v2928_v62 = vpop.f32.mrb[26].mxu0  ;;  %2949 = vmatprep.subr.bf16.mxu0 %v3072_v30  ;;  %v3073_v17 = vld [vmem:[%s3629_s7 + $0x108] sm:$0xff]  }
 0xcdc   :  { %v1915_v63 = vadd.f32 %v1911_v58, %v1901_v57  ;;  %v1904_v0 = vadd.f32 %v2928_v62, %v3488_v21  ;;  %v1895_v2 = vpop.f32.mrb[27].mxu0  ;;  %2950 = vmatpush3.bf16.msra.mxu0 %v3072_v30  ;;  %v3074_v21 = vld [vmem:[%s3629_s7 + $0x110] sm:$0xff]  }
 0xcdd   :  { %v1913_v3 = vadd.f32 %v1909_v61, %v1893_v60  ;;  %v1896_v4 = vadd.f32 %v1895_v2, %v3494_v34  ;;  %2951 = vmatprep.subr.bf16.mxu0 %v3073_v17  ;;  %v3075_v34 = vld [vmem:[%s3629_s7 + $0x118] sm:$0xff]  }
 0xcde   :  { %v1916_v6 = vadd.f32 %v1912_v1, %v1904_v0 }
 0xcdf   :  { %v1914_v7 = vadd.f32 %v1910_v5, %v1896_v4 }
 0xce0   :  { %v1918_v8 = vpack.c.bf16 %v1916_v6, %v1915_v63  ;;  %2952 = vmatpush3.bf16.msra.mxu0 %v3073_v17 }
 0xce1   :  { %v1917_v9 = vpack.c.bf16 %v1914_v7, %v1913_v3  ;;  %2953 = vmatprep.subr.bf16.mxu0 %v3074_v21 }
 0xce3   :  { %2945 = vmatprep.mubr.bf16.mxu1 %v1917_v9  ;;  %v3117_v9 = vmov 0.0  }
 0xce4   :  { %2946 = vmatmul.mubr.bf16.vlgmr.msra.gmra.mrb[24].mxu1 %v1918_v8  ;;  %2954 = vmatpush3.bf16.msra.mxu0 %v3074_v21  ;;  %v3115_v8 = vmov 0.0|0.0  }
 0xce5   :  { %2955 = vmatprep.subr.bf16.mxu0 %v3075_v34  ;;  %2980 = vmatprep.subr.bf16.mxu1 %v3115_v8 }
 0xce6   :  { %2977 = vmatprep.mubr.msk.f32.mxu1 %vm3116_vm1, %v3117_v9 }
 0xce8   :  { %2956 = vmatpush3.bf16.msra.mxu0 %v3075_v34 }
 0xce9   :  { %2957 = vmatprep.subr.bf16.mxu0 %v3076_v10 }
 0xcec   :  { %2958 = vmatpush3.bf16.msra.mxu0 %v3076_v10 }
 0xced   :  { %2959 = vmatprep.subr.bf16.mxu0 %v3077_v11 }
 0xcf0   :  { %2960 = vmatpush3.bf16.msra.mxu0 %v3077_v11 }
 0xcf1   :  { %2961 = vmatprep.subr.bf16.mxu0 %v3078_v12 }
 0xcf4   :  { %2962 = vmatpush3.bf16.msra.mxu0 %v3078_v12 }
 0xcf5   :  { %2963 = vmatprep.subr.bf16.mxu0 %v3079_v13 }
 0xcf8   :  { %2964 = vmatpush3.bf16.msra.mxu0 %v3079_v13 }
 0xdb7   :  { %v2947_v14 = vpop.f32.mrb[24].mxu1 }
 0xdb8   :  { %v2018_v15 = vpop.f32.mrb[25].mxu1  ;;  %v2049_v25 = vmul.f32 %v2947_v14, %v2947_v14 }
 0xdb9   :  { %v2948_v16 = vpop.f32.mrb[26].mxu1  ;;  %v2047_v22 = vmul.f32 %v2018_v15, %v2018_v15 }
 0xdba   :  { %v2021_v20 = vpop.f32.mrb[27].mxu1  ;;  %v2050_v29 = vmul.f32 %v2948_v16, %v2948_v16 }
 0xdbb   :  { %v2037_v23 = vadd.f32 %v2021_v20, %v2018_v15  ;;  %v2048_v24 = vmul.f32 %v2021_v20, %v2021_v20 }
 0xdbd   :  { %v2038_v27 = vadd.f32 %v2947_v14, %v2037_v23  ;;  %v2051_v28 = vadd.f32 %v2048_v24, %v2047_v22 }
 0xdbf   :  { %v2039_v31 = vadd.f32 %v2948_v16, %v2038_v27  ;;  %v2052_v18 = vadd.f32 %v2051_v28, %v2049_v25 }
 0xdc1   :  { %v2040_v26 = vrot.slane %v2039_v31, 4  ;;  %v2053_v32 = vadd.f32 %v2052_v18, %v2050_v29 }
 0xdc3   :  { %v2041_v33 = vadd.f32 %v2040_v26, %v2039_v31  ;;  %v2054_v35 = vrot.slane %v2053_v32, 4 }
 0xdc5   :  { %v2042_v36 = vrot.slane %v2041_v33, 2  ;;  %v2055_v37 = vadd.f32 %v2054_v35, %v2053_v32 }
 0xdc7   :  { %v2043_v38 = vadd.f32 %v2042_v36, %v2041_v33  ;;  %v2056_v39 = vrot.slane %v2055_v37, 2 }
 0xdc9   :  { %v2044_v40 = vrot.slane %v2043_v38, 1  ;;  %v2057_v41 = vadd.f32 %v2056_v39, %v2055_v37 }
 0xdcb   :  { %v2045_v42 = vadd.f32 %v2044_v40, %v2043_v38  ;;  %v2058_v43 = vrot.slane %v2057_v41, 1 }
 0xdcd   :  { %v2046_v44 = vmul.f32 0.03125, %v2045_v42  ;;  %v2059_v45 = vadd.f32 %v2058_v43, %v2057_v41  ;;  %v2601_v42 = vld [vmem:[%s3630_s8 + $0x4] sm:$0x1] }
 0xdcf   :  { %v2060_v46 = vmul.f32 0.03125, %v2059_v45  ;;  %v2061_v47 = vmul.f32 %v2046_v44, %v2046_v44  ;;  %v2602_v45 = vld [vmem:[%s3631_s9 + $0x4] sm:$0x1] }
 0xdd1   :  { %v2062_v48 = vsub.f32 %v2060_v46, %v2061_v47 }
 0xdd3   :  { %v2063_v49 = vadd.f32 1e-05, %v2062_v48 }
 0xdd5   :  { %3096 = vrsqrt.f32 %v2063_v49 }
 0xddf   :  { %v3097_v51 = vpop.eup %3096 }
 0xde0   :  { %v2065_v52 = vmul.f32 %v3097_v51, %v2575_v50 }
 0xde2   :  { %v2066_v54 = vmul.f32 %v2065_v52, %v2046_v44  ;;  %v2072_v55 = vrot.slane %v2065_v52, %v3276_v19 }
 0xde4   :  { %v2067_v56 = vsub.f32 %v2576_v53, %v2066_v54  ;;  %v2075_v57 = vmul.f32 %v2072_v55, %v2021_v20  ;;  %v2074_v58 = vmul.f32 %v2072_v55, %v2018_v15  ;;  %v2076_v59 = vmul.f32 %v2947_v14, %v2072_v55 }
 0xde5   :  { %v2077_v60 = vmul.f32 %v2948_v16, %v2072_v55 }
 0xde6   :  { %v2082_v61 = vrot.slane %v2067_v56, %v3276_v19 }
 0xde8   :  { %v2085_v62 = vadd.f32 %v2082_v61, %v2075_v57  ;;  %v2084_v63 = vadd.f32 %v2082_v61, %v2074_v58  ;;  %v2086_v0 = vadd.f32 %v2082_v61, %v2076_v59  ;;  %v2087_v1 = vadd.f32 %v2082_v61, %v2077_v60 }
 0xdea   :  { %v2088_v2 = vmax.f32 %v2084_v63, 0.0  ;;  %v2089_v3 = vmax.f32 %v2085_v62, 0.0  ;;  %v2090_v4 = vmax.f32 %v2086_v0, 0.0  ;;  %v2091_v5 = vmax.f32 %v2087_v1, 0.0  ;;  %v2271_v0 = vld [vmem:[%s3632_s10] sm:$0xf] }
 0xdec   :  { %v2092_v6 = vpack.c.bf16 %v2089_v3, %v2088_v2  ;;  %v2093_v7 = vpack.c.bf16 %v2091_v5, %v2090_v4 }
 0xdee   :  { %2965 = vmatprep.mubr.bf16.mxu0 %v2092_v6 }
 0xdef   :  { %2966 = vmatmul.mubr.bf16.vlgmr.msra.gmra.mrb[28].mxu0 %v2093_v7 }
 0xec2   :  { %v2967_v30 = vpop.f32.mrb[28].mxu0 }
 0xec3   :  { %v2193_v17 = vpop.f32.mrb[29].mxu0  ;;  %v2224_v13 = vmul.f32 %v2967_v30, %v2967_v30 }
 0xec4   :  { %v2968_v21 = vpop.f32.mrb[30].mxu0  ;;  %v2222_v10 = vmul.f32 %v2193_v17, %v2193_v17 }
 0xec5   :  { %v2196_v34 = vpop.f32.mrb[31].mxu0  ;;  %v2225_v16 = vmul.f32 %v2968_v21, %v2968_v21 }
 0xec6   :  { %v2212_v11 = vadd.f32 %v2196_v34, %v2193_v17  ;;  %v2223_v12 = vmul.f32 %v2196_v34, %v2196_v34 }
 0xec8   :  { %v2213_v14 = vadd.f32 %v2967_v30, %v2212_v11  ;;  %v2226_v15 = vadd.f32 %v2223_v12, %v2222_v10 }
 0xeca   :  { %v2214_v20 = vadd.f32 %v2968_v21, %v2213_v14  ;;  %v2227_v22 = vadd.f32 %v2226_v15, %v2224_v13 }
 0xecc   :  { %v2215_v23 = vrot.slane %v2214_v20, 4  ;;  %v2228_v24 = vadd.f32 %v2227_v22, %v2225_v16 }
 0xece   :  { %v2216_v25 = vadd.f32 %v2215_v23, %v2214_v20  ;;  %v2229_v27 = vrot.slane %v2228_v24, 4 }
 0xed0   :  { %v2217_v28 = vrot.slane %v2216_v25, 2  ;;  %v2230_v29 = vadd.f32 %v2229_v27, %v2228_v24 }
 0xed2   :  { %v2218_v31 = vadd.f32 %v2217_v28, %v2216_v25  ;;  %v2231_v18 = vrot.slane %v2230_v29, 2 }
 0xed4   :  { %v2219_v26 = vrot.slane %v2218_v31, 1  ;;  %v2232_v32 = vadd.f32 %v2231_v18, %v2230_v29 }
 0xed6   :  { %v2220_v33 = vadd.f32 %v2219_v26, %v2218_v31  ;;  %v2233_v35 = vrot.slane %v2232_v32, 1 }
 0xed8   :  { %v2221_v36 = vmul.f32 0.03125, %v2220_v33  ;;  %v2234_v37 = vadd.f32 %v2233_v35, %v2232_v32 }
 0xeda   :  { %v2235_v38 = vmul.f32 0.03125, %v2234_v37  ;;  %v2236_v39 = vmul.f32 %v2221_v36, %v2221_v36 }
 0xedc   :  { %v2237_v40 = vsub.f32 %v2235_v38, %v2236_v39 }
 0xede   :  { %v2238_v41 = vadd.f32 1e-05, %v2237_v40 }
 0xee0   :  { %3098 = vrsqrt.f32 %v2238_v41 }
 0xeea   :  { %v3099_v43 = vpop.eup %3098 }
 0xeeb   :  { %v2240_v44 = vmul.f32 %v3099_v43, %v2601_v42 }
 0xeed   :  { %v2241_v46 = vmul.f32 %v2240_v44, %v2221_v36  ;;  %v2247_v47 = vrot.slane %v2240_v44, %v3276_v19 }
 0xeef   :  { %v2242_v48 = vsub.f32 %v2602_v45, %v2241_v46  ;;  %v2249_v49 = vmul.f32 %v2247_v47, %v2193_v17  ;;  %v2250_v50 = vmul.f32 %v2247_v47, %v2196_v34  ;;  %v2251_v51 = vmul.f32 %v2967_v30, %v2247_v47 }
 0xef0   :  { %v2252_v52 = vmul.f32 %v2968_v21, %v2247_v47 }
 0xef1   :  { %v2257_v53 = vrot.slane %v2242_v48, %v3276_v19 }
 0xef3   :  { %v2259_v54 = vadd.f32 %v2257_v53, %v2249_v49  ;;  %v2260_v55 = vadd.f32 %v2257_v53, %v2250_v50  ;;  %v2261_v56 = vadd.f32 %v2257_v53, %v2251_v51  ;;  %v2262_v57 = vadd.f32 %v2257_v53, %v2252_v52 }
 0xef5   :  { %v2263_v58 = vmax.f32 %v2259_v54, 0.0  ;;  %v2264_v59 = vmax.f32 %v2260_v55, 0.0  ;;  %v2265_v60 = vmax.f32 %v2261_v56, 0.0  ;;  %v2266_v61 = vmax.f32 %v2262_v57, 0.0 }
 0xef7   :  { %v2981_v62 = vpack.c.bf16 %v2264_v59, %v2263_v58  ;;  %v2984_v63 = vpack.c.bf16 %v2266_v61, %v2265_v60 }
 0xef9   :  { %2982 = vmatpush3.bf16.msra.mxu1 %v2981_v62 }
 0xefa   :  { %2983 = vmatprep.subr.bf16.mxu1 %v3115_v8 }
 0xefd   :  { %2985 = vmatpush3.bf16.msra.mxu1 %v2984_v63 }
 0xf00   :  { %2978 = vmatmul.mubr.msk.f32.vlgmr.msra.gmra.mrb[28].mxu1 %vm84_vm0, %v2271_v0 }
 0xfd3   :  { %v2345_v19 = vpop.f32.mrb[28].mxu1 }
 0xfd4   :  { %2349 = vst [vmem:[%s3633_s11] sm:$0xf] %v2345_v19  ;;  %v2979_v1 = vpop.f32.mrb[29].mxu1 }
 0xfd5   :  { %2354 = vsyncpa [#allocation4], 1 }

</bundles_post_ra>
